<compile_context>
chip_gen: v6e
topology: v6e:2x2x1
jax: 0.10.0
libtpu: 0.0.40
codegen_flags: <defaults>
</compile_context>

<pallas_src>
import functools

import jax
import jax.numpy as jnp
import numpy as np
from jax.experimental import pallas as pl
from jax.experimental.pallas import tpu as pltpu


def _round_up(x: int, m: int) -> int:
    return (x + m - 1) // m * m


def gru_chunk_kernel(gi_ref, whh_ref, bhn_ref, out_ref, h_ref, *,
                     t_chunk: int, unroll: int):
    """One grid step = one (batch block, time chunk).

    gi_ref : (Bb, T_CHUNK, 3*Hp) f32  precomputed x@W_ih + b_ih + [b_hr, b_hz, 0]
    whh_ref: (Hp, 3*Hp)          bf16 fused hidden-to-hidden weights (zero-padded)
    bhn_ref: (1, Hp)             f32  n-gate hidden bias (must stay inside r*(...))
    out_ref: (Bb, T_CHUNK, Hp)   f32  per-timestep hidden outputs
    h_ref  : (Bb, Hp)            f32  VMEM hidden state carried across time chunks
    """
    c = pl.program_id(1)                       # time-chunk index (serial axis)

    @pl.when(c == 0)
    def _init():
        h_ref[...] = jnp.zeros_like(h_ref)

    bb, hp = h_ref.shape
    # Hoist tiny constant broadcasts out of the serial loop (JAX does not CSE them).
    b_hn = jnp.broadcast_to(bhn_ref[...], (bb, hp))
    t_iota = jax.lax.broadcasted_iota(jnp.int32, (bb, unroll, hp), 1)

    n_blocks = t_chunk // unroll               # static; t_chunk % unroll == 0

    def block_body(blk, h):
        base = pl.multiple_of(blk * unroll, unroll)
        # Staging tile for `unroll` timesteps -> one dense (8,128)-aligned store.
        stage = jnp.zeros((bb, unroll, hp), jnp.float32)
        for j in range(unroll):                # statically unrolled inner steps
            gi = gi_ref[:, base + j, :]        # (Bb, 3Hp)
            # bf16 operands, f32 accumulation; W_hh indexed inside the dot so it
            # is streamed from VMEM rather than held live across the whole loop.
            gh = jnp.dot(h.astype(whh_ref.dtype), whh_ref[...],
                         preferred_element_type=jnp.float32)   # (Bb, 3Hp)
            r = jax.nn.sigmoid(gi[:, :hp] + gh[:, :hp])
            z = jax.nn.sigmoid(gi[:, hp:2 * hp] + gh[:, hp:2 * hp])
            n = jnp.tanh(gi[:, 2 * hp:] + r * (gh[:, 2 * hp:] + b_hn))
            h = (1.0 - z) * n + z * h
            stage = jnp.where(t_iota == j, h[:, None, :], stage)
        out_ref[:, pl.ds(base, unroll), :] = stage
        return h

    h_ref[...] = jax.lax.fori_loop(0, n_blocks, block_body, h_ref[...])


def _pad_gate_cols(w, h: int, hp: int):
    """Zero-pad each of the 3 gate blocks along the last axis from h to hp."""
    if hp == h:
        return w
    gates = jnp.split(w, 3, axis=-1)
    pad = [(0, 0)] * (w.ndim - 1) + [(0, hp - h)]
    return jnp.concatenate([jnp.pad(g, pad) for g in gates], axis=-1)


@jax.jit
def encoder_forward(tokens, emb_table, w_ih, w_hh, b_ih, b_hh):
    """tokens: int32 [B, T].  Fused-gate params (gate order r,z,n):
         w_ih (E, 3H), w_hh (H, 3H), b_ih (3H,), b_hh (3H,).
    Returns (rnn_out [B, T, H], hidden [1, B, H])."""
    B, T = tokens.shape
    H = w_hh.shape[0]

    Hp = _round_up(H, 128)                       # lane-dense hidden width
    UNROLL = 8
    t_chunk = min(_round_up(T, UNROLL), 256)     # big chunks => few ~0.35us grid steps
    t_pad = _round_up(T, t_chunk)
    num_chunks = t_pad // t_chunk

    # v7x: give the second TensorCore its own batch block when it is worth it.
    num_b_blocks = 2 if (B >= 16 and B % 2 == 0) else 1
    bb = B // num_b_blocks

    # --- zero-pad parameters once (padding is numerically inert: h0 == 0) ----
    w_ih_p = _pad_gate_cols(w_ih, H, Hp)                                  # (E, 3Hp)
    w_hh_p = _pad_gate_cols(jnp.pad(w_hh, ((0, Hp - H), (0, 0))), H, Hp)  # (Hp, 3Hp)
    b_ih_p = _pad_gate_cols(b_ih, H, Hp)                                  # (3Hp,)
    b_hh_p = _pad_gate_cols(b_hh, H, Hp)                                  # (3Hp,)

    # Fold b_hh_r / b_hh_z into the precomputed input projection; only the
    # n-gate hidden bias must stay inside r * (gh_n + b_hn).
    b_fused = b_ih_p + jnp.concatenate(
        [b_hh_p[:2 * Hp], jnp.zeros((Hp,), jnp.float32)])
    b_hn = b_hh_p[2 * Hp:].reshape(1, Hp)                                 # (1, Hp)

    # bf16 matmul operands; accumulation and gate math stay f32 in the kernel.
    w_hh_bf16 = w_hh_p.astype(jnp.bfloat16)

    # --- embedding lookup + ONE big gate-fused input-projection GEMM (XLA) ---
    x_emb = jnp.take(emb_table, tokens, axis=0)                           # (B, T, E)
    gi = jnp.einsum('bte,eg->btg', x_emb, w_ih_p) + b_fused               # (B, T, 3Hp)
    if t_pad > T:
        # Zero-padded timesteps are inert: outputs are sliced back to [:T] and
        # the returned hidden is out[:, T-1].
        gi = jnp.pad(gi, ((0, 0), (0, t_pad - T), (0, 0)))

    kernel = functools.partial(gru_chunk_kernel, t_chunk=t_chunk, unroll=UNROLL)

    # VMEM budget from the actual resident (double-buffered) blocks + headroom.
    vmem_bytes = (2 * bb * t_chunk * 3 * Hp * 4          # gi blocks
                  + 2 * bb * t_chunk * Hp * 4            # out blocks
                  + 2 * Hp * 3 * Hp * 2                  # W_hh (bf16)
                  + 2 * Hp * 4 + bb * Hp * 4)            # b_hn + hidden carry
    vmem_limit = int(min(max(2 * vmem_bytes, 16 << 20), 64 << 20))

    out = pl.pallas_call(
        kernel,
        out_shape=jax.ShapeDtypeStruct((B, t_pad, Hp), jnp.float32),
        grid_spec=pltpu.PrefetchScalarGridSpec(
            num_scalar_prefetch=0,
            grid=(num_b_blocks, num_chunks),
            in_specs=[
                pl.BlockSpec((bb, t_chunk, 3 * Hp), lambda b, c: (b, c, 0)),  # gi
                pl.BlockSpec((Hp, 3 * Hp), lambda b, c: (0, 0)),              # W_hh
                pl.BlockSpec((1, Hp), lambda b, c: (0, 0)),                   # b_hn
            ],
            out_specs=pl.BlockSpec((bb, t_chunk, Hp), lambda b, c: (b, c, 0)),
            scratch_shapes=[pltpu.VMEM((bb, Hp), jnp.float32)],               # h carry
        ),
        compiler_params=pltpu.CompilerParams(
            dimension_semantics=("parallel", "arbitrary"),   # batch ∥, time serial
            vmem_limit_bytes=vmem_limit,
        ),
    )(gi, w_hh_bf16, b_hn)

    rnn_out = out[:, :T, :H]                 # (B, T, H)
    hidden = out[:, T - 1, :H][None]         # (1, B, H) == last timestep hidden
    return rnn_out, hidden


def reference_forward(tokens, emb_table, w_ih, w_hh, b_ih, b_hh):
    """Pure-JAX f32 reference matching PyTorch GRU semantics (gate order r,z,n)."""
    B, T = tokens.shape
    H = w_hh.shape[0]
    x = jnp.take(emb_table, tokens, axis=0)            # (B, T, E)

    def step(h, x_t):
        gi = x_t @ w_ih + b_ih
        gh = h @ w_hh + b_hh
        r = jax.nn.sigmoid(gi[:, :H] + gh[:, :H])
        z = jax.nn.sigmoid(gi[:, H:2 * H] + gh[:, H:2 * H])
        n = jnp.tanh(gi[:, 2 * H:] + r * gh[:, 2 * H:])
        h_new = (1.0 - z) * n + z * h
        return h_new, h_new

    h0 = jnp.zeros((B, H), jnp.float32)
    hT, outs = jax.lax.scan(step, h0, jnp.transpose(x, (1, 0, 2)))
    return jnp.transpose(outs, (1, 0, 2)), hT[None]


if __name__ == "__main__":
    # Small synthetic config consistent with the module's forward.
    VOCAB, EMB, HID = 50, 32, 32
    B, T = 2, 8

    key = jax.random.PRNGKey(0)
    k_tok, k_emb, k_wih, k_whh, k_bih, k_bhh = jax.random.split(key, 6)

    tokens = jax.random.randint(k_tok, (B, T), 0, VOCAB, dtype=jnp.int32)

    # PyTorch-like init: Embedding ~ N(0,1); GRU params ~ U(-1/sqrt(H), 1/sqrt(H)).
    # Weights stored gate-fused: (E, 3H) / (H, 3H) / (3H,), gate order (r, z, n)
    # (i.e. weight_ih_l0.T / weight_hh_l0.T in PyTorch terms).
    emb_table = jax.random.normal(k_emb, (VOCAB, EMB), jnp.float32)
    bound = 1.0 / np.sqrt(HID)
    w_ih = jax.random.uniform(k_wih, (EMB, 3 * HID), jnp.float32, -bound, bound)
    w_hh = jax.random.uniform(k_whh, (HID, 3 * HID), jnp.float32, -bound, bound)
    b_ih = jax.random.uniform(k_bih, (3 * HID,), jnp.float32, -bound, bound)
    b_hh = jax.random.uniform(k_bhh, (3 * HID,), jnp.float32, -bound, bound)

    rnn_out, hidden = encoder_forward(tokens, emb_table, w_ih, w_hh, b_ih, b_hh)
    jax.block_until_ready((rnn_out, hidden))

    ref_out, ref_hidden = reference_forward(tokens, emb_table, w_ih, w_hh, b_ih, b_hh)
    assert rnn_out.shape == (B, T, HID)
    assert hidden.shape == (1, B, HID)
    # Tolerance relaxed vs the f32 reference because the h@W_hh matmul operands
    # are bf16 (accumulation and gate math remain f32).
    np.testing.assert_allclose(np.asarray(rnn_out), np.asarray(ref_out),
                               rtol=2e-2, atol=2e-2)
    np.testing.assert_allclose(np.asarray(hidden), np.asarray(ref_hidden),
                               rtol=2e-2, atol=2e-2)

    print("KERNEL_OK")
</pallas_src>

<mosaic_0001>
module attributes {stable_mosaic.version = 11 : i64} {
  func.func @gru_chunk_kernel(%arg0: i32, %arg1: i32, %arg2: memref<2x8x384xf32, #tpu.memory_space<vmem>>, %arg3: memref<128x384xbf16, #tpu.memory_space<vmem>>, %arg4: memref<1x128xf32, #tpu.memory_space<vmem>>, %arg5: memref<2x8x128xf32, #tpu.memory_space<vmem>>, %arg6: memref<2x128xf32, #tpu.memory_space<vmem>>) attributes {dimension_semantics = [#tpu.dimension_semantics<parallel>, #tpu.dimension_semantics<arbitrary>], iteration_bounds = array<i64: 1, 1>, scalar_prefetch = 0 : i64, scratch_operands = 1 : i64, tpu.core_type = #tpu.core_type<tc>, window_params = [{transform_indices = @transform_0, window_bounds = array<i64: 2, 8, 384>}, {pipeline_mode = #tpu.pipeline_mode<synchronous>, transform_indices = @transform_1, window_bounds = array<i64: 128, 384>}, {pipeline_mode = #tpu.pipeline_mode<synchronous>, transform_indices = @transform_2, window_bounds = array<i64: 1, 128>}, {transform_indices = @transform_3, window_bounds = array<i64: 2, 8, 128>}]} {
    %c0_i32 = arith.constant 0 : i32
    %0 = arith.cmpi eq, %arg1, %c0_i32 : i32
    %1 = arith.extui %0 : i1 to i32
    %c0_i32_0 = arith.constant 0 : i32
    %2 = arith.cmpi ne, %1, %c0_i32_0 : i32
    scf.if %2 {
      %cst_83 = arith.constant 0.000000e+00 : f32
      %334 = vector.broadcast %cst_83 : f32 to vector<2x128xf32>
      %c0_84 = arith.constant 0 : index
      %c0_85 = arith.constant 0 : index
      %335 = vector.load %arg6[%c0_84, %c0_85] : memref<2x128xf32, #tpu.memory_space<vmem>>, vector<2x128xf32>
      tpu.vector_store %arg6[%c0_84, %c0_85], %334 {strides = array<i32>} : memref<2x128xf32, #tpu.memory_space<vmem>>, vector<2x128xf32>,
    } else {
    }
    %c0 = arith.constant 0 : index
    %c0_1 = arith.constant 0 : index
    %3 = vector.load %arg4[%c0, %c0_1] : memref<1x128xf32, #tpu.memory_space<vmem>>, vector<1x128xf32>
    %4 = vector.shape_cast %3 : vector<1x128xf32> to vector<1x128xf32>
    %5 = vector.broadcast %4 : vector<1x128xf32> to vector<2x128xf32>
    %6 = tpu.iota {dimensions = array<i32: 1>} : vector<2x8x128xi32>
    %c0_2 = arith.constant 0 : index
    %c0_3 = arith.constant 0 : index
    %7 = vector.load %arg6[%c0_2, %c0_3] : memref<2x128xf32, #tpu.memory_space<vmem>>, vector<2x128xf32>
    %c0_i32_4 = arith.constant 0 : i32
    %c8_i32 = arith.constant 8 : i32
    %8 = arith.muli %c0_i32_4, %c8_i32 : i32
    %9 = tpu.assume_multiple %8, 8 : i32
    %cst = arith.constant 0.000000e+00 : f32
    %10 = vector.broadcast %cst : f32 to vector<2x8x128xf32>
    %c0_i32_5 = arith.constant 0 : i32
    %11 = arith.addi %9, %c0_i32_5 : i32
    %c0_6 = arith.constant 0 : index
    %12 = arith.index_cast %11 : i32 to index
    %c0_7 = arith.constant 0 : index
    %13 = vector.load %arg2[%c0_6, %12, %c0_7] : memref<2x8x384xf32, #tpu.memory_space<vmem>>, vector<2x1x384xf32>
    %14 = vector.shape_cast %13 : vector<2x1x384xf32> to vector<2x384xf32>
    %15 = arith.truncf %7 : vector<2x128xf32> to vector<2x128xbf16>
    %c0_8 = arith.constant 0 : index
    %c0_9 = arith.constant 0 : index
    %16 = vector.load %arg3[%c0_8, %c0_9] : memref<128x384xbf16, #tpu.memory_space<vmem>>, vector<128x384xbf16>
    %cst_10 = arith.constant dense<0.000000e+00> : vector<2x384xf32>
    %17 = tpu.matmul %15, %16, %cst_10 {dimension_numbers = #tpu.dot_dimension_numbers<[1], [0], [0], [1], [0, 0, 1, 1], [], []>} : vector<2x128xbf16>, vector<128x384xbf16>, vector<2x384xf32> -> vector<2x384xf32>
    %18 = vector.extract_strided_slice %14 {offsets = [0, 0], sizes = [2, 128], strides = [1, 1]} : vector<2x384xf32> to vector<2x128xf32>
    %19 = vector.extract_strided_slice %17 {offsets = [0, 0], sizes = [2, 128], strides = [1, 1]} : vector<2x384xf32> to vector<2x128xf32>
    %20 = arith.addf %18, %19 : vector<2x128xf32>
    %21 = arith.negf %20 : vector<2x128xf32>
    %22 = math.exp %21 : vector<2x128xf32>
    %cst_11 = arith.constant 1.000000e+00 : f32
    %23 = vector.broadcast %cst_11 : f32 to vector<2x128xf32>
    %24 = arith.addf %23, %22 : vector<2x128xf32>
    %25 = arith.divf %23, %24 : vector<2x128xf32>
    %26 = vector.extract_strided_slice %14 {offsets = [0, 128], sizes = [2, 128], strides = [1, 1]} : vector<2x384xf32> to vector<2x128xf32>
    %27 = vector.extract_strided_slice %17 {offsets = [0, 128], sizes = [2, 128], strides = [1, 1]} : vector<2x384xf32> to vector<2x128xf32>
    %28 = arith.addf %26, %27 : vector<2x128xf32>
    %29 = arith.negf %28 : vector<2x128xf32>
    %30 = math.exp %29 : vector<2x128xf32>
    %cst_12 = arith.constant 1.000000e+00 : f32
    %31 = vector.broadcast %cst_12 : f32 to vector<2x128xf32>
    %32 = arith.addf %31, %30 : vector<2x128xf32>
    %33 = arith.divf %31, %32 : vector<2x128xf32>
    %34 = vector.extract_strided_slice %14 {offsets = [0, 256], sizes = [2, 128], strides = [1, 1]} : vector<2x384xf32> to vector<2x128xf32>
    %35 = vector.extract_strided_slice %17 {offsets = [0, 256], sizes = [2, 128], strides = [1, 1]} : vector<2x384xf32> to vector<2x128xf32>
    %36 = arith.addf %35, %5 : vector<2x128xf32>
    %37 = arith.mulf %25, %36 : vector<2x128xf32>
    %38 = arith.addf %34, %37 : vector<2x128xf32>
    %39 = math.tanh %38 : vector<2x128xf32>
    %cst_13 = arith.constant 1.000000e+00 : f32
    %40 = vector.broadcast %cst_13 : f32 to vector<2x128xf32>
    %41 = arith.subf %40, %33 : vector<2x128xf32>
    %42 = arith.mulf %41, %39 : vector<2x128xf32>
    %43 = arith.mulf %33, %7 : vector<2x128xf32>
    %44 = arith.addf %42, %43 : vector<2x128xf32>
    %c0_i32_14 = arith.constant 0 : i32
    %45 = vector.broadcast %c0_i32_14 : i32 to vector<2x8x128xi32>
    %46 = arith.cmpi eq, %6, %45 : vector<2x8x128xi32>
    %47 = vector.shape_cast %44 : vector<2x128xf32> to vector<2x1x128xf32>
    %48 = vector.shape_cast %47 : vector<2x1x128xf32> to vector<2x1x128xf32>
    %49 = vector.broadcast %48 : vector<2x1x128xf32> to vector<2x8x128xf32>
    %50 = arith.select %46, %49, %10 : vector<2x8x128xi1>, vector<2x8x128xf32>
    %c1_i32 = arith.constant 1 : i32
    %51 = arith.addi %9, %c1_i32 : i32
    %c0_15 = arith.constant 0 : index
    %52 = arith.index_cast %51 : i32 to index
    %c0_16 = arith.constant 0 : index
    %53 = vector.load %arg2[%c0_15, %52, %c0_16] : memref<2x8x384xf32, #tpu.memory_space<vmem>>, vector<2x1x384xf32>
    %54 = vector.shape_cast %53 : vector<2x1x384xf32> to vector<2x384xf32>
    %55 = arith.truncf %44 : vector<2x128xf32> to vector<2x128xbf16>
    %c0_17 = arith.constant 0 : index
    %c0_18 = arith.constant 0 : index
    %56 = vector.load %arg3[%c0_17, %c0_18] : memref<128x384xbf16, #tpu.memory_space<vmem>>, vector<128x384xbf16>
    %cst_19 = arith.constant dense<0.000000e+00> : vector<2x384xf32>
    %57 = tpu.matmul %55, %56, %cst_19 {dimension_numbers = #tpu.dot_dimension_numbers<[1], [0], [0], [1], [0, 0, 1, 1], [], []>} : vector<2x128xbf16>, vector<128x384xbf16>, vector<2x384xf32> -> vector<2x384xf32>
    %58 = vector.extract_strided_slice %54 {offsets = [0, 0], sizes = [2, 128], strides = [1, 1]} : vector<2x384xf32> to vector<2x128xf32>
    %59 = vector.extract_strided_slice %57 {offsets = [0, 0], sizes = [2, 128], strides = [1, 1]} : vector<2x384xf32> to vector<2x128xf32>
    %60 = arith.addf %58, %59 : vector<2x128xf32>
    %61 = arith.negf %60 : vector<2x128xf32>
    %62 = math.exp %61 : vector<2x128xf32>
    %cst_20 = arith.constant 1.000000e+00 : f32
    %63 = vector.broadcast %cst_20 : f32 to vector<2x128xf32>
    %64 = arith.addf %63, %62 : vector<2x128xf32>
    %65 = arith.divf %63, %64 : vector<2x128xf32>
    %66 = vector.extract_strided_slice %54 {offsets = [0, 128], sizes = [2, 128], strides = [1, 1]} : vector<2x384xf32> to vector<2x128xf32>
    %67 = vector.extract_strided_slice %57 {offsets = [0, 128], sizes = [2, 128], strides = [1, 1]} : vector<2x384xf32> to vector<2x128xf32>
    %68 = arith.addf %66, %67 : vector<2x128xf32>
    %69 = arith.negf %68 : vector<2x128xf32>
    %70 = math.exp %69 : vector<2x128xf32>
    %cst_21 = arith.constant 1.000000e+00 : f32
    %71 = vector.broadcast %cst_21 : f32 to vector<2x128xf32>
    %72 = arith.addf %71, %70 : vector<2x128xf32>
    %73 = arith.divf %71, %72 : vector<2x128xf32>
    %74 = vector.extract_strided_slice %54 {offsets = [0, 256], sizes = [2, 128], strides = [1, 1]} : vector<2x384xf32> to vector<2x128xf32>
    %75 = vector.extract_strided_slice %57 {offsets = [0, 256], sizes = [2, 128], strides = [1, 1]} : vector<2x384xf32> to vector<2x128xf32>
    %76 = arith.addf %75, %5 : vector<2x128xf32>
    %77 = arith.mulf %65, %76 : vector<2x128xf32>
    %78 = arith.addf %74, %77 : vector<2x128xf32>
    %79 = math.tanh %78 : vector<2x128xf32>
    %cst_22 = arith.constant 1.000000e+00 : f32
    %80 = vector.broadcast %cst_22 : f32 to vector<2x128xf32>
    %81 = arith.subf %80, %73 : vector<2x128xf32>
    %82 = arith.mulf %81, %79 : vector<2x128xf32>
    %83 = arith.mulf %73, %44 : vector<2x128xf32>
    %84 = arith.addf %82, %83 : vector<2x128xf32>
    %c1_i32_23 = arith.constant 1 : i32
    %85 = vector.broadcast %c1_i32_23 : i32 to vector<2x8x128xi32>
    %86 = arith.cmpi eq, %6, %85 : vector<2x8x128xi32>
    %87 = vector.shape_cast %84 : vector<2x128xf32> to vector<2x1x128xf32>
    %88 = vector.shape_cast %87 : vector<2x1x128xf32> to vector<2x1x128xf32>
    %89 = vector.broadcast %88 : vector<2x1x128xf32> to vector<2x8x128xf32>
    %90 = arith.select %86, %89, %50 : vector<2x8x128xi1>, vector<2x8x128xf32>
    %c2_i32 = arith.constant 2 : i32
    %91 = arith.addi %9, %c2_i32 : i32
    %c0_24 = arith.constant 0 : index
    %92 = arith.index_cast %91 : i32 to index
    %c0_25 = arith.constant 0 : index
    %93 = vector.load %arg2[%c0_24, %92, %c0_25] : memref<2x8x384xf32, #tpu.memory_space<vmem>>, vector<2x1x384xf32>
    %94 = vector.shape_cast %93 : vector<2x1x384xf32> to vector<2x384xf32>
    %95 = arith.truncf %84 : vector<2x128xf32> to vector<2x128xbf16>
    %c0_26 = arith.constant 0 : index
    %c0_27 = arith.constant 0 : index
    %96 = vector.load %arg3[%c0_26, %c0_27] : memref<128x384xbf16, #tpu.memory_space<vmem>>, vector<128x384xbf16>
    %cst_28 = arith.constant dense<0.000000e+00> : vector<2x384xf32>
    %97 = tpu.matmul %95, %96, %cst_28 {dimension_numbers = #tpu.dot_dimension_numbers<[1], [0], [0], [1], [0, 0, 1, 1], [], []>} : vector<2x128xbf16>, vector<128x384xbf16>, vector<2x384xf32> -> vector<2x384xf32>
    %98 = vector.extract_strided_slice %94 {offsets = [0, 0], sizes = [2, 128], strides = [1, 1]} : vector<2x384xf32> to vector<2x128xf32>
    %99 = vector.extract_strided_slice %97 {offsets = [0, 0], sizes = [2, 128], strides = [1, 1]} : vector<2x384xf32> to vector<2x128xf32>
    %100 = arith.addf %98, %99 : vector<2x128xf32>
    %101 = arith.negf %100 : vector<2x128xf32>
    %102 = math.exp %101 : vector<2x128xf32>
    %cst_29 = arith.constant 1.000000e+00 : f32
    %103 = vector.broadcast %cst_29 : f32 to vector<2x128xf32>
    %104 = arith.addf %103, %102 : vector<2x128xf32>
    %105 = arith.divf %103, %104 : vector<2x128xf32>
    %106 = vector.extract_strided_slice %94 {offsets = [0, 128], sizes = [2, 128], strides = [1, 1]} : vector<2x384xf32> to vector<2x128xf32>
    %107 = vector.extract_strided_slice %97 {offsets = [0, 128], sizes = [2, 128], strides = [1, 1]} : vector<2x384xf32> to vector<2x128xf32>
    %108 = arith.addf %106, %107 : vector<2x128xf32>
    %109 = arith.negf %108 : vector<2x128xf32>
    %110 = math.exp %109 : vector<2x128xf32>
    %cst_30 = arith.constant 1.000000e+00 : f32
    %111 = vector.broadcast %cst_30 : f32 to vector<2x128xf32>
    %112 = arith.addf %111, %110 : vector<2x128xf32>
    %113 = arith.divf %111, %112 : vector<2x128xf32>
    %114 = vector.extract_strided_slice %94 {offsets = [0, 256], sizes = [2, 128], strides = [1, 1]} : vector<2x384xf32> to vector<2x128xf32>
    %115 = vector.extract_strided_slice %97 {offsets = [0, 256], sizes = [2, 128], strides = [1, 1]} : vector<2x384xf32> to vector<2x128xf32>
    %116 = arith.addf %115, %5 : vector<2x128xf32>
    %117 = arith.mulf %105, %116 : vector<2x128xf32>
    %118 = arith.addf %114, %117 : vector<2x128xf32>
    %119 = math.tanh %118 : vector<2x128xf32>
    %cst_31 = arith.constant 1.000000e+00 : f32
    %120 = vector.broadcast %cst_31 : f32 to vector<2x128xf32>
    %121 = arith.subf %120, %113 : vector<2x128xf32>
    %122 = arith.mulf %121, %119 : vector<2x128xf32>
    %123 = arith.mulf %113, %84 : vector<2x128xf32>
    %124 = arith.addf %122, %123 : vector<2x128xf32>
    %c2_i32_32 = arith.constant 2 : i32
    %125 = vector.broadcast %c2_i32_32 : i32 to vector<2x8x128xi32>
    %126 = arith.cmpi eq, %6, %125 : vector<2x8x128xi32>
    %127 = vector.shape_cast %124 : vector<2x128xf32> to vector<2x1x128xf32>
    %128 = vector.shape_cast %127 : vector<2x1x128xf32> to vector<2x1x128xf32>
    %129 = vector.broadcast %128 : vector<2x1x128xf32> to vector<2x8x128xf32>
    %130 = arith.select %126, %129, %90 : vector<2x8x128xi1>, vector<2x8x128xf32>
    %c3_i32 = arith.constant 3 : i32
    %131 = arith.addi %9, %c3_i32 : i32
    %c0_33 = arith.constant 0 : index
    %132 = arith.index_cast %131 : i32 to index
    %c0_34 = arith.constant 0 : index
    %133 = vector.load %arg2[%c0_33, %132, %c0_34] : memref<2x8x384xf32, #tpu.memory_space<vmem>>, vector<2x1x384xf32>
    %134 = vector.shape_cast %133 : vector<2x1x384xf32> to vector<2x384xf32>
    %135 = arith.truncf %124 : vector<2x128xf32> to vector<2x128xbf16>
    %c0_35 = arith.constant 0 : index
    %c0_36 = arith.constant 0 : index
    %136 = vector.load %arg3[%c0_35, %c0_36] : memref<128x384xbf16, #tpu.memory_space<vmem>>, vector<128x384xbf16>
    %cst_37 = arith.constant dense<0.000000e+00> : vector<2x384xf32>
    %137 = tpu.matmul %135, %136, %cst_37 {dimension_numbers = #tpu.dot_dimension_numbers<[1], [0], [0], [1], [0, 0, 1, 1], [], []>} : vector<2x128xbf16>, vector<128x384xbf16>, vector<2x384xf32> -> vector<2x384xf32>
    %138 = vector.extract_strided_slice %134 {offsets = [0, 0], sizes = [2, 128], strides = [1, 1]} : vector<2x384xf32> to vector<2x128xf32>
    %139 = vector.extract_strided_slice %137 {offsets = [0, 0], sizes = [2, 128], strides = [1, 1]} : vector<2x384xf32> to vector<2x128xf32>
    %140 = arith.addf %138, %139 : vector<2x128xf32>
    %141 = arith.negf %140 : vector<2x128xf32>
    %142 = math.exp %141 : vector<2x128xf32>
    %cst_38 = arith.constant 1.000000e+00 : f32
    %143 = vector.broadcast %cst_38 : f32 to vector<2x128xf32>
    %144 = arith.addf %143, %142 : vector<2x128xf32>
    %145 = arith.divf %143, %144 : vector<2x128xf32>
    %146 = vector.extract_strided_slice %134 {offsets = [0, 128], sizes = [2, 128], strides = [1, 1]} : vector<2x384xf32> to vector<2x128xf32>
    %147 = vector.extract_strided_slice %137 {offsets = [0, 128], sizes = [2, 128], strides = [1, 1]} : vector<2x384xf32> to vector<2x128xf32>
    %148 = arith.addf %146, %147 : vector<2x128xf32>
    %149 = arith.negf %148 : vector<2x128xf32>
    %150 = math.exp %149 : vector<2x128xf32>
    %cst_39 = arith.constant 1.000000e+00 : f32
    %151 = vector.broadcast %cst_39 : f32 to vector<2x128xf32>
    %152 = arith.addf %151, %150 : vector<2x128xf32>
    %153 = arith.divf %151, %152 : vector<2x128xf32>
    %154 = vector.extract_strided_slice %134 {offsets = [0, 256], sizes = [2, 128], strides = [1, 1]} : vector<2x384xf32> to vector<2x128xf32>
    %155 = vector.extract_strided_slice %137 {offsets = [0, 256], sizes = [2, 128], strides = [1, 1]} : vector<2x384xf32> to vector<2x128xf32>
    %156 = arith.addf %155, %5 : vector<2x128xf32>
    %157 = arith.mulf %145, %156 : vector<2x128xf32>
    %158 = arith.addf %154, %157 : vector<2x128xf32>
    %159 = math.tanh %158 : vector<2x128xf32>
    %cst_40 = arith.constant 1.000000e+00 : f32
    %160 = vector.broadcast %cst_40 : f32 to vector<2x128xf32>
    %161 = arith.subf %160, %153 : vector<2x128xf32>
    %162 = arith.mulf %161, %159 : vector<2x128xf32>
    %163 = arith.mulf %153, %124 : vector<2x128xf32>
    %164 = arith.addf %162, %163 : vector<2x128xf32>
    %c3_i32_41 = arith.constant 3 : i32
    %165 = vector.broadcast %c3_i32_41 : i32 to vector<2x8x128xi32>
    %166 = arith.cmpi eq, %6, %165 : vector<2x8x128xi32>
    %167 = vector.shape_cast %164 : vector<2x128xf32> to vector<2x1x128xf32>
    %168 = vector.shape_cast %167 : vector<2x1x128xf32> to vector<2x1x128xf32>
    %169 = vector.broadcast %168 : vector<2x1x128xf32> to vector<2x8x128xf32>
    %170 = arith.select %166, %169, %130 : vector<2x8x128xi1>, vector<2x8x128xf32>
    %c4_i32 = arith.constant 4 : i32
    %171 = arith.addi %9, %c4_i32 : i32
    %c0_42 = arith.constant 0 : index
    %172 = arith.index_cast %171 : i32 to index
    %c0_43 = arith.constant 0 : index
    %173 = vector.load %arg2[%c0_42, %172, %c0_43] : memref<2x8x384xf32, #tpu.memory_space<vmem>>, vector<2x1x384xf32>
    %174 = vector.shape_cast %173 : vector<2x1x384xf32> to vector<2x384xf32>
    %175 = arith.truncf %164 : vector<2x128xf32> to vector<2x128xbf16>
    %c0_44 = arith.constant 0 : index
    %c0_45 = arith.constant 0 : index
    %176 = vector.load %arg3[%c0_44, %c0_45] : memref<128x384xbf16, #tpu.memory_space<vmem>>, vector<128x384xbf16>
    %cst_46 = arith.constant dense<0.000000e+00> : vector<2x384xf32>
    %177 = tpu.matmul %175, %176, %cst_46 {dimension_numbers = #tpu.dot_dimension_numbers<[1], [0], [0], [1], [0, 0, 1, 1], [], []>} : vector<2x128xbf16>, vector<128x384xbf16>, vector<2x384xf32> -> vector<2x384xf32>
    %178 = vector.extract_strided_slice %174 {offsets = [0, 0], sizes = [2, 128], strides = [1, 1]} : vector<2x384xf32> to vector<2x128xf32>
    %179 = vector.extract_strided_slice %177 {offsets = [0, 0], sizes = [2, 128], strides = [1, 1]} : vector<2x384xf32> to vector<2x128xf32>
    %180 = arith.addf %178, %179 : vector<2x128xf32>
    %181 = arith.negf %180 : vector<2x128xf32>
    %182 = math.exp %181 : vector<2x128xf32>
    %cst_47 = arith.constant 1.000000e+00 : f32
    %183 = vector.broadcast %cst_47 : f32 to vector<2x128xf32>
    %184 = arith.addf %183, %182 : vector<2x128xf32>
    %185 = arith.divf %183, %184 : vector<2x128xf32>
    %186 = vector.extract_strided_slice %174 {offsets = [0, 128], sizes = [2, 128], strides = [1, 1]} : vector<2x384xf32> to vector<2x128xf32>
    %187 = vector.extract_strided_slice %177 {offsets = [0, 128], sizes = [2, 128], strides = [1, 1]} : vector<2x384xf32> to vector<2x128xf32>
    %188 = arith.addf %186, %187 : vector<2x128xf32>
    %189 = arith.negf %188 : vector<2x128xf32>
    %190 = math.exp %189 : vector<2x128xf32>
    %cst_48 = arith.constant 1.000000e+00 : f32
    %191 = vector.broadcast %cst_48 : f32 to vector<2x128xf32>
    %192 = arith.addf %191, %190 : vector<2x128xf32>
    %193 = arith.divf %191, %192 : vector<2x128xf32>
    %194 = vector.extract_strided_slice %174 {offsets = [0, 256], sizes = [2, 128], strides = [1, 1]} : vector<2x384xf32> to vector<2x128xf32>
    %195 = vector.extract_strided_slice %177 {offsets = [0, 256], sizes = [2, 128], strides = [1, 1]} : vector<2x384xf32> to vector<2x128xf32>
    %196 = arith.addf %195, %5 : vector<2x128xf32>
    %197 = arith.mulf %185, %196 : vector<2x128xf32>
    %198 = arith.addf %194, %197 : vector<2x128xf32>
    %199 = math.tanh %198 : vector<2x128xf32>
    %cst_49 = arith.constant 1.000000e+00 : f32
    %200 = vector.broadcast %cst_49 : f32 to vector<2x128xf32>
    %201 = arith.subf %200, %193 : vector<2x128xf32>
    %202 = arith.mulf %201, %199 : vector<2x128xf32>
    %203 = arith.mulf %193, %164 : vector<2x128xf32>
    %204 = arith.addf %202, %203 : vector<2x128xf32>
    %c4_i32_50 = arith.constant 4 : i32
    %205 = vector.broadcast %c4_i32_50 : i32 to vector<2x8x128xi32>
    %206 = arith.cmpi eq, %6, %205 : vector<2x8x128xi32>
    %207 = vector.shape_cast %204 : vector<2x128xf32> to vector<2x1x128xf32>
    %208 = vector.shape_cast %207 : vector<2x1x128xf32> to vector<2x1x128xf32>
    %209 = vector.broadcast %208 : vector<2x1x128xf32> to vector<2x8x128xf32>
    %210 = arith.select %206, %209, %170 : vector<2x8x128xi1>, vector<2x8x128xf32>
    %c5_i32 = arith.constant 5 : i32
    %211 = arith.addi %9, %c5_i32 : i32
    %c0_51 = arith.constant 0 : index
    %212 = arith.index_cast %211 : i32 to index
    %c0_52 = arith.constant 0 : index
    %213 = vector.load %arg2[%c0_51, %212, %c0_52] : memref<2x8x384xf32, #tpu.memory_space<vmem>>, vector<2x1x384xf32>
    %214 = vector.shape_cast %213 : vector<2x1x384xf32> to vector<2x384xf32>
    %215 = arith.truncf %204 : vector<2x128xf32> to vector<2x128xbf16>
    %c0_53 = arith.constant 0 : index
    %c0_54 = arith.constant 0 : index
    %216 = vector.load %arg3[%c0_53, %c0_54] : memref<128x384xbf16, #tpu.memory_space<vmem>>, vector<128x384xbf16>
    %cst_55 = arith.constant dense<0.000000e+00> : vector<2x384xf32>
    %217 = tpu.matmul %215, %216, %cst_55 {dimension_numbers = #tpu.dot_dimension_numbers<[1], [0], [0], [1], [0, 0, 1, 1], [], []>} : vector<2x128xbf16>, vector<128x384xbf16>, vector<2x384xf32> -> vector<2x384xf32>
    %218 = vector.extract_strided_slice %214 {offsets = [0, 0], sizes = [2, 128], strides = [1, 1]} : vector<2x384xf32> to vector<2x128xf32>
    %219 = vector.extract_strided_slice %217 {offsets = [0, 0], sizes = [2, 128], strides = [1, 1]} : vector<2x384xf32> to vector<2x128xf32>
    %220 = arith.addf %218, %219 : vector<2x128xf32>
    %221 = arith.negf %220 : vector<2x128xf32>
    %222 = math.exp %221 : vector<2x128xf32>
    %cst_56 = arith.constant 1.000000e+00 : f32
    %223 = vector.broadcast %cst_56 : f32 to vector<2x128xf32>
    %224 = arith.addf %223, %222 : vector<2x128xf32>
    %225 = arith.divf %223, %224 : vector<2x128xf32>
    %226 = vector.extract_strided_slice %214 {offsets = [0, 128], sizes = [2, 128], strides = [1, 1]} : vector<2x384xf32> to vector<2x128xf32>
    %227 = vector.extract_strided_slice %217 {offsets = [0, 128], sizes = [2, 128], strides = [1, 1]} : vector<2x384xf32> to vector<2x128xf32>
    %228 = arith.addf %226, %227 : vector<2x128xf32>
    %229 = arith.negf %228 : vector<2x128xf32>
    %230 = math.exp %229 : vector<2x128xf32>
    %cst_57 = arith.constant 1.000000e+00 : f32
    %231 = vector.broadcast %cst_57 : f32 to vector<2x128xf32>
    %232 = arith.addf %231, %230 : vector<2x128xf32>
    %233 = arith.divf %231, %232 : vector<2x128xf32>
    %234 = vector.extract_strided_slice %214 {offsets = [0, 256], sizes = [2, 128], strides = [1, 1]} : vector<2x384xf32> to vector<2x128xf32>
    %235 = vector.extract_strided_slice %217 {offsets = [0, 256], sizes = [2, 128], strides = [1, 1]} : vector<2x384xf32> to vector<2x128xf32>
    %236 = arith.addf %235, %5 : vector<2x128xf32>
    %237 = arith.mulf %225, %236 : vector<2x128xf32>
    %238 = arith.addf %234, %237 : vector<2x128xf32>
    %239 = math.tanh %238 : vector<2x128xf32>
    %cst_58 = arith.constant 1.000000e+00 : f32
    %240 = vector.broadcast %cst_58 : f32 to vector<2x128xf32>
    %241 = arith.subf %240, %233 : vector<2x128xf32>
    %242 = arith.mulf %241, %239 : vector<2x128xf32>
    %243 = arith.mulf %233, %204 : vector<2x128xf32>
    %244 = arith.addf %242, %243 : vector<2x128xf32>
    %c5_i32_59 = arith.constant 5 : i32
    %245 = vector.broadcast %c5_i32_59 : i32 to vector<2x8x128xi32>
    %246 = arith.cmpi eq, %6, %245 : vector<2x8x128xi32>
    %247 = vector.shape_cast %244 : vector<2x128xf32> to vector<2x1x128xf32>
    %248 = vector.shape_cast %247 : vector<2x1x128xf32> to vector<2x1x128xf32>
    %249 = vector.broadcast %248 : vector<2x1x128xf32> to vector<2x8x128xf32>
    %250 = arith.select %246, %249, %210 : vector<2x8x128xi1>, vector<2x8x128xf32>
    %c6_i32 = arith.constant 6 : i32
    %251 = arith.addi %9, %c6_i32 : i32
    %c0_60 = arith.constant 0 : index
    %252 = arith.index_cast %251 : i32 to index
    %c0_61 = arith.constant 0 : index
    %253 = vector.load %arg2[%c0_60, %252, %c0_61] : memref<2x8x384xf32, #tpu.memory_space<vmem>>, vector<2x1x384xf32>
    %254 = vector.shape_cast %253 : vector<2x1x384xf32> to vector<2x384xf32>
    %255 = arith.truncf %244 : vector<2x128xf32> to vector<2x128xbf16>
    %c0_62 = arith.constant 0 : index
    %c0_63 = arith.constant 0 : index
    %256 = vector.load %arg3[%c0_62, %c0_63] : memref<128x384xbf16, #tpu.memory_space<vmem>>, vector<128x384xbf16>
    %cst_64 = arith.constant dense<0.000000e+00> : vector<2x384xf32>
    %257 = tpu.matmul %255, %256, %cst_64 {dimension_numbers = #tpu.dot_dimension_numbers<[1], [0], [0], [1], [0, 0, 1, 1], [], []>} : vector<2x128xbf16>, vector<128x384xbf16>, vector<2x384xf32> -> vector<2x384xf32>
    %258 = vector.extract_strided_slice %254 {offsets = [0, 0], sizes = [2, 128], strides = [1, 1]} : vector<2x384xf32> to vector<2x128xf32>
    %259 = vector.extract_strided_slice %257 {offsets = [0, 0], sizes = [2, 128], strides = [1, 1]} : vector<2x384xf32> to vector<2x128xf32>
    %260 = arith.addf %258, %259 : vector<2x128xf32>
    %261 = arith.negf %260 : vector<2x128xf32>
    %262 = math.exp %261 : vector<2x128xf32>
    %cst_65 = arith.constant 1.000000e+00 : f32
    %263 = vector.broadcast %cst_65 : f32 to vector<2x128xf32>
    %264 = arith.addf %263, %262 : vector<2x128xf32>
    %265 = arith.divf %263, %264 : vector<2x128xf32>
    %266 = vector.extract_strided_slice %254 {offsets = [0, 128], sizes = [2, 128], strides = [1, 1]} : vector<2x384xf32> to vector<2x128xf32>
    %267 = vector.extract_strided_slice %257 {offsets = [0, 128], sizes = [2, 128], strides = [1, 1]} : vector<2x384xf32> to vector<2x128xf32>
    %268 = arith.addf %266, %267 : vector<2x128xf32>
    %269 = arith.negf %268 : vector<2x128xf32>
    %270 = math.exp %269 : vector<2x128xf32>
    %cst_66 = arith.constant 1.000000e+00 : f32
    %271 = vector.broadcast %cst_66 : f32 to vector<2x128xf32>
    %272 = arith.addf %271, %270 : vector<2x128xf32>
    %273 = arith.divf %271, %272 : vector<2x128xf32>
    %274 = vector.extract_strided_slice %254 {offsets = [0, 256], sizes = [2, 128], strides = [1, 1]} : vector<2x384xf32> to vector<2x128xf32>
    %275 = vector.extract_strided_slice %257 {offsets = [0, 256], sizes = [2, 128], strides = [1, 1]} : vector<2x384xf32> to vector<2x128xf32>
    %276 = arith.addf %275, %5 : vector<2x128xf32>
    %277 = arith.mulf %265, %276 : vector<2x128xf32>
    %278 = arith.addf %274, %277 : vector<2x128xf32>
    %279 = math.tanh %278 : vector<2x128xf32>
    %cst_67 = arith.constant 1.000000e+00 : f32
    %280 = vector.broadcast %cst_67 : f32 to vector<2x128xf32>
    %281 = arith.subf %280, %273 : vector<2x128xf32>
    %282 = arith.mulf %281, %279 : vector<2x128xf32>
    %283 = arith.mulf %273, %244 : vector<2x128xf32>
    %284 = arith.addf %282, %283 : vector<2x128xf32>
    %c6_i32_68 = arith.constant 6 : i32
    %285 = vector.broadcast %c6_i32_68 : i32 to vector<2x8x128xi32>
    %286 = arith.cmpi eq, %6, %285 : vector<2x8x128xi32>
    %287 = vector.shape_cast %284 : vector<2x128xf32> to vector<2x1x128xf32>
    %288 = vector.shape_cast %287 : vector<2x1x128xf32> to vector<2x1x128xf32>
    %289 = vector.broadcast %288 : vector<2x1x128xf32> to vector<2x8x128xf32>
    %290 = arith.select %286, %289, %250 : vector<2x8x128xi1>, vector<2x8x128xf32>
    %c7_i32 = arith.constant 7 : i32
    %291 = arith.addi %9, %c7_i32 : i32
    %c0_69 = arith.constant 0 : index
    %292 = arith.index_cast %291 : i32 to index
    %c0_70 = arith.constant 0 : index
    %293 = vector.load %arg2[%c0_69, %292, %c0_70] : memref<2x8x384xf32, #tpu.memory_space<vmem>>, vector<2x1x384xf32>
    %294 = vector.shape_cast %293 : vector<2x1x384xf32> to vector<2x384xf32>
    %295 = arith.truncf %284 : vector<2x128xf32> to vector<2x128xbf16>
    %c0_71 = arith.constant 0 : index
    %c0_72 = arith.constant 0 : index
    %296 = vector.load %arg3[%c0_71, %c0_72] : memref<128x384xbf16, #tpu.memory_space<vmem>>, vector<128x384xbf16>
    %cst_73 = arith.constant dense<0.000000e+00> : vector<2x384xf32>
    %297 = tpu.matmul %295, %296, %cst_73 {dimension_numbers = #tpu.dot_dimension_numbers<[1], [0], [0], [1], [0, 0, 1, 1], [], []>} : vector<2x128xbf16>, vector<128x384xbf16>, vector<2x384xf32> -> vector<2x384xf32>
    %298 = vector.extract_strided_slice %294 {offsets = [0, 0], sizes = [2, 128], strides = [1, 1]} : vector<2x384xf32> to vector<2x128xf32>
    %299 = vector.extract_strided_slice %297 {offsets = [0, 0], sizes = [2, 128], strides = [1, 1]} : vector<2x384xf32> to vector<2x128xf32>
    %300 = arith.addf %298, %299 : vector<2x128xf32>
    %301 = arith.negf %300 : vector<2x128xf32>
    %302 = math.exp %301 : vector<2x128xf32>
    %cst_74 = arith.constant 1.000000e+00 : f32
    %303 = vector.broadcast %cst_74 : f32 to vector<2x128xf32>
    %304 = arith.addf %303, %302 : vector<2x128xf32>
    %305 = arith.divf %303, %304 : vector<2x128xf32>
    %306 = vector.extract_strided_slice %294 {offsets = [0, 128], sizes = [2, 128], strides = [1, 1]} : vector<2x384xf32> to vector<2x128xf32>
    %307 = vector.extract_strided_slice %297 {offsets = [0, 128], sizes = [2, 128], strides = [1, 1]} : vector<2x384xf32> to vector<2x128xf32>
    %308 = arith.addf %306, %307 : vector<2x128xf32>
    %309 = arith.negf %308 : vector<2x128xf32>
    %310 = math.exp %309 : vector<2x128xf32>
    %cst_75 = arith.constant 1.000000e+00 : f32
    %311 = vector.broadcast %cst_75 : f32 to vector<2x128xf32>
    %312 = arith.addf %311, %310 : vector<2x128xf32>
    %313 = arith.divf %311, %312 : vector<2x128xf32>
    %314 = vector.extract_strided_slice %294 {offsets = [0, 256], sizes = [2, 128], strides = [1, 1]} : vector<2x384xf32> to vector<2x128xf32>
    %315 = vector.extract_strided_slice %297 {offsets = [0, 256], sizes = [2, 128], strides = [1, 1]} : vector<2x384xf32> to vector<2x128xf32>
    %316 = arith.addf %315, %5 : vector<2x128xf32>
    %317 = arith.mulf %305, %316 : vector<2x128xf32>
    %318 = arith.addf %314, %317 : vector<2x128xf32>
    %319 = math.tanh %318 : vector<2x128xf32>
    %cst_76 = arith.constant 1.000000e+00 : f32
    %320 = vector.broadcast %cst_76 : f32 to vector<2x128xf32>
    %321 = arith.subf %320, %313 : vector<2x128xf32>
    %322 = arith.mulf %321, %319 : vector<2x128xf32>
    %323 = arith.mulf %313, %284 : vector<2x128xf32>
    %324 = arith.addf %322, %323 : vector<2x128xf32>
    %c7_i32_77 = arith.constant 7 : i32
    %325 = vector.broadcast %c7_i32_77 : i32 to vector<2x8x128xi32>
    %326 = arith.cmpi eq, %6, %325 : vector<2x8x128xi32>
    %327 = vector.shape_cast %324 : vector<2x128xf32> to vector<2x1x128xf32>
    %328 = vector.shape_cast %327 : vector<2x1x128xf32> to vector<2x1x128xf32>
    %329 = vector.broadcast %328 : vector<2x1x128xf32> to vector<2x8x128xf32>
    %330 = arith.select %326, %329, %290 : vector<2x8x128xi1>, vector<2x8x128xf32>
    %c0_78 = arith.constant 0 : index
    %331 = arith.index_cast %9 : i32 to index
    %c0_79 = arith.constant 0 : index
    %332 = vector.load %arg5[%c0_78, %331, %c0_79] : memref<2x8x128xf32, #tpu.memory_space<vmem>>, vector<2x8x128xf32>
    tpu.vector_store %arg5[%c0_78, %331, %c0_79], %330 {strides = array<i32>} : memref<2x8x128xf32, #tpu.memory_space<vmem>>, vector<2x8x128xf32>,
    %c1_i32_80 = arith.constant 1 : i32
    %c0_81 = arith.constant 0 : index
    %c0_82 = arith.constant 0 : index
    %333 = vector.load %arg6[%c0_81, %c0_82] : memref<2x128xf32, #tpu.memory_space<vmem>>, vector<2x128xf32>
    tpu.vector_store %arg6[%c0_81, %c0_82], %324 {strides = array<i32>} : memref<2x128xf32, #tpu.memory_space<vmem>>, vector<2x128xf32>,
    return
  }
  func.func @transform_0(%arg0: i32, %arg1: i32) -> (i32, i32, i32) {
    %c0_i32 = arith.constant 0 : i32
    %c0_i32_0 = arith.constant 0 : i32
    return %arg0, %arg1, %c0_i32 : i32, i32, i32
  }
  func.func @transform_1(%arg0: i32, %arg1: i32) -> (i32, i32) {
    %c0_i32 = arith.constant 0 : i32
    %c0_i32_0 = arith.constant 0 : i32
    %c0_i32_1 = arith.constant 0 : i32
    return %c0_i32, %c0_i32_0 : i32, i32
  }
  func.func @transform_2(%arg0: i32, %arg1: i32) -> (i32, i32) {
    %c0_i32 = arith.constant 0 : i32
    %c0_i32_0 = arith.constant 0 : i32
    %c0_i32_1 = arith.constant 0 : i32
    return %c0_i32, %c0_i32_0 : i32, i32
  }
  func.func @transform_3(%arg0: i32, %arg1: i32) -> (i32, i32, i32) {
    %c0_i32 = arith.constant 0 : i32
    %c0_i32_0 = arith.constant 0 : i32
    return %arg0, %arg1, %c0_i32 : i32, i32, i32
  }
}

</mosaic_0001>

<bundles_post_ra>
// kernel: encoder_forward.1
= control target key start
LH: loop header
LB: loop body
LE: loop exit
PB: predicated region body
PF: predicated region fallthrough
CT: control target
= control target key end

     0   :  { %v2781_v1 = vmov 0.0   ;;  %v2782_v2 = vmov 0   ;;  %vm2783_vm0 = vmmov 0   ;;  %v27_v28 = vlaneseq  ;;  %s3604_s1 = inlined_call_operand.vmem [shape: bf16[128,384], index: 1, kind: input, shape index: {}]   ;;  %s3605_s0 = inlined_call_operand.vmem [shape: f32[2,8,384], index: 0, kind: input, shape index: {}]   ;;  %s3606_s2 = inlined_call_operand.vmem [shape: f32[1,128], index: 2, kind: input, shape index: {}]   ;;  %s3607_s3 = inlined_call_operand.vmem [shape: f32[2,8,128], index: 3, kind: output, shape index: {}]  }
   0x1   :  { %v2808_v0 = vld [vmem:[%s3604_s1 + $0xac] ss:$12 sps:$4 sm:$0xff]   ;;  %2400 = vmatprep.subr.bf16.mxu1 %v2781_v1  ;;  %19 = vst [vmem:[#allocation2] sm:$0x3] %v2781_v1  ;;  %229 = vmatprep.mubr.bf16.mxu0 %v2782_v2  ;;  %v2816_v3 = vld [vmem:[%s3604_s1 + $0xa8] ss:$12 sps:$4 sm:$0xff]  }
   0x2   :  { %2416 = vmatprep.mubr.msk.bf16.mxu1 %vm2783_vm0, %v2781_v1  ;;  %197 = vmatprep.subr.bf16.mxu0 %v2808_v0  ;;  %v2824_v4 = vld [vmem:[%s3604_s1 + $0x94] ss:$12 sps:$4 sm:$0xff]   ;;  %v2830_v5 = vld [vmem:[%s3604_s1 + $0x90] ss:$12 sps:$4 sm:$0xff]   ;;  %v2842_v7 = vld [vmem:[%s3604_s1 + $0x78] ss:$12 sps:$4 sm:$0xff]  }
   0x3   :  { %198 = vmatpush1.bf16.msra.mxu0 %v2816_v3  ;;  %v2836_v6 = vld [vmem:[%s3604_s1 + $0x7c] ss:$12 sps:$4 sm:$0xff]   ;;  %v2848_v8 = vld [vmem:[%s3604_s1 + $0x64] ss:$12 sps:$4 sm:$0xff]   ;;  %v2859_v10 = vld [vmem:[%s3604_s1 + $0x60] ss:$12 sps:$4 sm:$0xff]  }
   0x4   :  { %199 = vmatprep.subr.bf16.mxu0 %v2824_v4  ;;  %v2853_v9 = vld [vmem:[%s3604_s1 + $0xb0] ss:$12 sps:$4 sm:$0xff]   ;;  %v2865_v11 = vld [vmem:[%s3604_s1 + $0x4c] ss:$12 sps:$4 sm:$0xff]   ;;  %v2877_v13 = vld [vmem:[%s3604_s1 + $0x48] ss:$12 sps:$4 sm:$0xff]  }
   0x5   :  { %2401 = vmatpush3.bf16.msra.mxu1 %v2853_v9  ;;  %v2871_v12 = vld [vmem:[%s3604_s1 + $0x98] ss:$12 sps:$4 sm:$0xff]   ;;  %v2883_v14 = vld [vmem:[%s3604_s1 + $0x34] ss:$12 sps:$4 sm:$0xff]   ;;  %v2897_v16 = vld [vmem:[%s3604_s1 + $0x30] ss:$12 sps:$4 sm:$0xff]  }
   0x6   :  { %2402 = vmatprep.subr.bf16.mxu1 %v2781_v1  ;;  %v2890_v15 = vld [vmem:[%s3604_s1 + $0x80] ss:$12 sps:$4 sm:$0xff]   ;;  %v2903_v17 = vld [vmem:[%s3604_s1 + $0x1c] ss:$12 sps:$4 sm:$0xff]   ;;  %v2916_v19 = vld [vmem:[%s3604_s1 + $0x18] ss:$12 sps:$4 sm:$0xff]  }
   0x7   :  { %200 = vmatpush1.bf16.msra.mxu0 %v2830_v5  ;;  %v2909_v18 = vld [vmem:[%s3604_s1 + $0x68] ss:$12 sps:$4 sm:$0xff]   ;;  %v2922_v20 = vld [vmem:[%s3604_s1 + $0x4] ss:$12 sps:$4 sm:$0xff]   ;;  %v2935_v22 = vld [vmem:[%s3604_s1] ss:$12 sps:$4 sm:$0xff]  }
   0x8   :  { %201 = vmatprep.subr.bf16.mxu0 %v2836_v6  ;;  %v2928_v21 = vld [vmem:[%s3604_s1 + $0x50] ss:$12 sps:$4 sm:$0xff]   ;;  %v2937_v23 = vld [vmem:[#allocation2] sm:$0x3]  ;;  %v2944_v24 = vld [vmem:[%s3604_s1 + $0x38] ss:$12 sps:$4 sm:$0xff]  }
   0x9   :  { %2403 = vmatpush3.bf16.msra.mxu1 %v2871_v12  ;;  %v36_v25 = vpack.c.bf16 %v2937_v23, %v2937_v23  ;;  %v2954_v26 = vld [vmem:[%s3604_s1 + $0x20] ss:$12 sps:$4 sm:$0xff]   ;;  %v2964_v27 = vld [vmem:[%s3604_s1 + $0x8] ss:$12 sps:$4 sm:$0xff]   ;;  %v2784_v29 = vmov 1966171168  }
   0xa   :  { %2404 = vmatprep.subr.bf16.mxu1 %v2781_v1  ;;  %v280_v30 = vunpack.c.l.s4 %v2784_v29  ;;  %v3002_v31 = vshrl.u32 %v27_v28, 7  ;;  %v33_v36 = vld [vmem:[%s3605_s0] ss:$8 sm:$0x7]  ;;  %vm466_vm1 = vcmask 1041409  }
   0xb   :  { %202 = vmatpush1.bf16.msra.mxu0 %v2842_v7  ;;  %v2249_v41 = vld [vmem:[%s3605_s0 + $0x18] ss:$8 sm:$0x7]  ;;  %v319_v49 = vrot.slane %v33_v36, 1 }
   0xc   :  { %203 = vmatprep.subr.bf16.mxu0 %v2848_v8  ;;  %v281_v32 = vunpack.c.0.s8 %v280_v30  ;;  %v320_v52 = vrot.slane %v2249_v41, 1  ;;  %v3022_v63 = vld [vmem:[%s3606_s2] ss:$0 sm:$0xff]  ;;  %vm431_vm2 = vcmp.eq.s32.totalorder %v3002_v31, 0  ;;  %vm679_vm3 = vcmp.eq.s32.totalorder %v3002_v31, 1 }
   0xd   :  { %2405 = vmatpush3.bf16.msra.mxu1 %v2890_v15  ;;  %vm926_vm4 = vcmp.eq.s32.totalorder %v3002_v31, 2  ;;  %vm1173_vm5 = vcmp.eq.s32.totalorder %v3002_v31, 3  ;;  %vm1420_vm6 = vcmp.eq.s32.totalorder %v3002_v31, 4  ;;  %vm1667_vm7 = vcmp.eq.s32.totalorder %v3002_v31, 5 }
   0xe   :  { %2406 = vmatprep.subr.bf16.mxu1 %v2781_v1  ;;  %v3005_v33 = vsub.s32 %v281_v32, %v3002_v31  ;;  %vm1914_vm8 = vcmp.eq.s32.totalorder %v3002_v31, 6  ;;  %vm2161_vm9 = vcmp.eq.s32.totalorder %v3002_v31, 7 }
   0xf   :  { %204 = vmatpush1.bf16.msra.mxu0 %v2859_v10 }
  0x10   :  { %205 = vmatprep.subr.bf16.mxu0 %v2865_v11 }
  0x11   :  { %2407 = vmatpush3.bf16.msra.mxu1 %v2909_v18 }
  0x12   :  { %2408 = vmatprep.subr.bf16.mxu1 %v2781_v1 }
  0x13   :  { %206 = vmatpush1.bf16.msra.mxu0 %v2877_v13 }
  0x14   :  { %207 = vmatprep.subr.bf16.mxu0 %v2883_v14 }
  0x15   :  { %2409 = vmatpush3.bf16.msra.mxu1 %v2928_v21 }
  0x16   :  { %2410 = vmatprep.subr.bf16.mxu1 %v2781_v1 }
  0x17   :  { %208 = vmatpush1.bf16.msra.mxu0 %v2897_v16 }
  0x18   :  { %209 = vmatprep.subr.bf16.mxu0 %v2903_v17 }
  0x19   :  { %2411 = vmatpush3.bf16.msra.mxu1 %v2944_v24 }
  0x1a   :  { %2412 = vmatprep.subr.bf16.mxu1 %v2781_v1 }
  0x1b   :  { %210 = vmatpush1.bf16.msra.mxu0 %v2916_v19 }
  0x1c   :  { %211 = vmatprep.subr.bf16.mxu0 %v2922_v20 }
  0x1d   :  { %2413 = vmatpush3.bf16.msra.mxu1 %v2954_v26 }
  0x1e   :  { %2414 = vmatprep.subr.bf16.mxu1 %v2781_v1 }
  0x1f   :  { %212 = vmatpush1.bf16.msra.mxu0 %v2935_v22 }
  0x20   :  { %470 = vmatprep.subr.bf16.mxu0 %v2808_v0 }
  0x21   :  { %2415 = vmatpush3.bf16.msra.mxu1 %v2964_v27 }
  0x22   :  { %230 = vmatmul.mubr.bf16.vlgmr.msra.gmra.mxu0 %v36_v25  ;;  %2420 = vmatprep.subr.bf16.mxu1 %v2781_v1 }
  0x23   :  { %471 = vmatpush1.bf16.msra.mxu0 %v2816_v3  ;;  %502 = vmatprep.mubr.bf16.mxu0 %v2782_v2 }
  0x24   :  { %472 = vmatprep.subr.bf16.mxu0 %v2824_v4  ;;  %2417 = vmatmul.mubr.bf16.vlgmr.msra.gmra.mxu1 %v36_v25 }
  0x25   :  { %2421 = vmatpush3.bf16.msra.mxu1 %v2853_v9  ;;  %2436 = vmatprep.mubr.msk.bf16.mxu1 %vm2783_vm0, %v2781_v1 }
  0x26   :  { %2422 = vmatprep.subr.bf16.mxu1 %v2781_v1 }
  0x27   :  { %473 = vmatpush1.bf16.msra.mxu0 %v2830_v5 }
  0x28   :  { %474 = vmatprep.subr.bf16.mxu0 %v2836_v6 }
  0x29   :  { %2423 = vmatpush3.bf16.msra.mxu1 %v2871_v12 }
  0x2a   :  { %2424 = vmatprep.subr.bf16.mxu1 %v2781_v1 }
  0x2b   :  { %475 = vmatpush1.bf16.msra.mxu0 %v2842_v7 }
  0x2c   :  { %476 = vmatprep.subr.bf16.mxu0 %v2848_v8 }
  0x2d   :  { %2425 = vmatpush3.bf16.msra.mxu1 %v2890_v15 }
  0x2e   :  { %2426 = vmatprep.subr.bf16.mxu1 %v2781_v1 }
  0x2f   :  { %477 = vmatpush1.bf16.msra.mxu0 %v2859_v10 }
  0x30   :  { %478 = vmatprep.subr.bf16.mxu0 %v2865_v11 }
  0x31   :  { %2427 = vmatpush3.bf16.msra.mxu1 %v2909_v18 }
  0x32   :  { %2428 = vmatprep.subr.bf16.mxu1 %v2781_v1 }
  0x33   :  { %479 = vmatpush1.bf16.msra.mxu0 %v2877_v13 }
  0x34   :  { %480 = vmatprep.subr.bf16.mxu0 %v2883_v14 }
  0x35   :  { %2429 = vmatpush3.bf16.msra.mxu1 %v2928_v21 }
  0x36   :  { %2430 = vmatprep.subr.bf16.mxu1 %v2781_v1 }
  0x37   :  { %481 = vmatpush1.bf16.msra.mxu0 %v2897_v16 }
  0x38   :  { %482 = vmatprep.subr.bf16.mxu0 %v2903_v17 }
  0x39   :  { %2431 = vmatpush3.bf16.msra.mxu1 %v2944_v24 }
  0x3a   :  { %2432 = vmatprep.subr.bf16.mxu1 %v2781_v1 }
  0x3b   :  { %483 = vmatpush1.bf16.msra.mxu0 %v2916_v19 }
  0x3c   :  { %484 = vmatprep.subr.bf16.mxu0 %v2922_v20 }
  0x3d   :  { %2433 = vmatpush3.bf16.msra.mxu1 %v2954_v26 }
  0x3e   :  { %2434 = vmatprep.subr.bf16.mxu1 %v2781_v1 }
  0x3f   :  { %485 = vmatpush1.bf16.msra.mxu0 %v2935_v22 }
  0x40   :  { %717 = vmatprep.subr.bf16.mxu0 %v2808_v0 }
  0x41   :  { %2435 = vmatpush3.bf16.msra.mxu1 %v2964_v27 }
  0x42   :  { %2440 = vmatprep.subr.bf16.mxu1 %v2781_v1 }
  0xe2   :  { %v231_v34 = vpop.f32.mrf.mxu0 }
  0xe3   :  { %v285_v35 = vrot.slane %v231_v34, %v3005_v33 }
  0xe4   :  { %v233_v37 = vpop.f32.mrf.mxu0  ;;  %v272_v54 = vpop.f32.mrf.mxu1 }
  0xe5   :  { %v286_v38 = vcombine.high %v285_v35, %v285_v35  ;;  %v293_v39 = vrot.slane %v285_v35, %v3005_v33  ;;  %v330_v40 = vrot.slane %v233_v37, %v3005_v33  ;;  %v362_v30 = vadd.f32 %v3022_v63, %v272_v54 }
  0xe6   :  { %v235_v42 = vpop.f32.mrf.mxu0  ;;  %v2418_v56 = vpop.f32.mrf.mxu1 }
  0xe7   :  { %v300_v43 = vrot.slane %v286_v38, %v3005_v33  ;;  %v303_v44 = vadd.f32 %v293_v39, %v33_v36  ;;  %v331_v45 = vcombine.high %v330_v40, %v330_v40  ;;  %v338_v50 = vrot.slane %v330_v40, %v3005_v33 }
  0xe8   :  { %v236_v46 = vpop.f32.mrf.mxu0  ;;  %v275_v58 = vpop.f32.mrf.mxu1  ;;  %v370_v32 = vrot.slane %v362_v30, %v3005_v33  ;;  %v390_v40 = vrot.slane %v33_v36, 2 }
  0xe9   :  { %v304_v47 = vadd.f32 %v2249_v41, %v300_v43  ;;  %v2274_v48 = vmul.f32 -1.442695, %v303_v44  ;;  %v345_v53 = vrot.slane %v331_v45, %v3005_v33  ;;  %v348_v55 = vadd.f32 %v338_v50, %v319_v49 }
  0xea   :  { %v2419_v60 = vpop.f32.mrf.mxu1  ;;  %v371_v35 = vcombine.high %v370_v32, %v370_v32  ;;  %v378_v39 = vrot.slane %v370_v32, %v3005_v33  ;;  %v391_v45 = vrot.slane %v2249_v41, 2 }
  0xeb   :  { %2596 = vpow2.f32 %v2274_v48  ;;  %v2275_v51 = vmul.f32 -1.442695, %v304_v47  ;;  %v349_v57 = vadd.f32 %v345_v53, %v320_v52  ;;  %v2276_v59 = vmul.f32 -1.442695, %v348_v55 }
  0xec   :  { %v385_v43 = vrot.slane %v371_v35, %v3005_v33 }
  0xed   :  { %2598 = vpow2.f32 %v2275_v51  ;;  %v2277_v61 = vmul.f32 -1.442695, %v349_v57  ;;  %v409_v51 = vrot.slane %v2937_v23, %v3005_v33 }
  0xee   :  { %2600 = vpow2.f32 %v2276_v59 }
  0xef   :  { %2602 = vpow2.f32 %v2277_v61  ;;  %v410_v52 = vcombine.high %v409_v51, %v409_v51  ;;  %v417_v36 = vrot.slane %v409_v51, %v3005_v33 }
  0xf1   :  { %v424_v55 = vrot.slane %v410_v52, %v3005_v33 }
  0xf8   :  { %v2597_v62 = vpop.eup %2596 }
  0xf9   :  { %v311_v25 = vadd.f32 1.0, %v2597_v62 }
  0xfa   :  { %v2599_v28 = vpop.eup %2598 }
  0xfb   :  { %v312_v29 = vadd.f32 1.0, %v2599_v28  ;;  %2604 = vrcp.f32 %v311_v25  ;;  %v2601_v34 = vpop.eup %2600 }
  0xfc   :  { %v2603_v37 = vpop.eup %2602  ;;  %v356_v38 = vadd.f32 1.0, %v2601_v34 }
  0xfd   :  { %2606 = vrcp.f32 %v312_v29  ;;  %v357_v42 = vadd.f32 1.0, %v2603_v37 }
  0xfe   :  { %2608 = vrcp.f32 %v356_v38 }
  0xff   :  { %2610 = vrcp.f32 %v357_v42  ;;  %v2278_v42 = vld [vmem:[%s3605_s0 + $0x1] ss:$8 sm:$0x7] }
 0x108   :  { %v2605_v44 = vpop.eup %2604 }
 0x109   :  { %v388_v46 = vmul.f32 %v2605_v44, %v378_v39 }
 0x10a   :  { %v2607_v47 = vpop.eup %2606 }
 0x10b   :  { %v389_v48 = vmul.f32 %v2607_v47, %v385_v43  ;;  %v394_v49 = vadd.f32 %v390_v40, %v388_v46  ;;  %v2609_v53 = vpop.eup %2608 }
 0x10c   :  { %v2611_v54 = vpop.eup %2610  ;;  %v398_v41 = vsub.f32 1.0, %v2609_v53  ;;  %v427_v59 = vmul.f32 %v2609_v53, %v417_v36 }
 0x10d   :  { %v395_v50 = vadd.f32 %v391_v45, %v389_v48  ;;  %2612 = vtanh.f32 %v394_v49  ;;  %v399_v57 = vsub.f32 1.0, %v2611_v54  ;;  %v428_v62 = vmul.f32 %v2611_v54, %v424_v55  ;;  %v2280_v48 = vld [vmem:[%s3605_s0 + $0x19] ss:$8 sm:$0x7] }
 0x10f   :  { %2614 = vtanh.f32 %v395_v50 }
 0x11a   :  { %v2613_v56 = vpop.eup %2612 }
 0x11b   :  { %v400_v58 = vmul.f32 %v2613_v56, %v398_v41  ;;  %v592_v56 = vrot.slane %v2278_v42, 1 }
 0x11c   :  { %v2615_v60 = vpop.eup %2614 }
 0x11d   :  { %v401_v61 = vmul.f32 %v2615_v60, %v399_v57  ;;  %v3032_v25 = vadd.f32 %v427_v59, %v400_v58  ;;  %v593_v59 = vrot.slane %v2280_v48, 1 }
 0x11f   :  { %v3034_v28 = vadd.f32 %v428_v62, %v401_v61  ;;  %v459_v23 = vpack.c.bf16 %v3032_v25, %v3032_v25 }
 0x121   :  { %v460_v29 = vpack.c.bf16 %v3034_v28, %v3034_v28  ;;  %v463_v32 = vunpack.c.l.b16 %v459_v23 }
 0x123   :  { %v464_v30 = vunpack.c.l.b16 %v460_v29 }
 0x125   :  { %v465_v34 = vrot.slane %v464_v30, 7 }
 0x127   :  { %v467_v35 = vsel %vm466_vm1, %v465_v34, %v463_v32 }
 0x128   :  { %v468_v37 = vpack.c.b16 %v467_v35, %v467_v35 }
 0x12a   :  { %503 = vmatmul.mubr.bf16.vlgmr.msra.gmra.mxu0 %v468_v37  ;;  %2437 = vmatmul.mubr.bf16.vlgmr.msra.gmra.mxu1 %v468_v37 }
 0x12b   :  { %718 = vmatpush1.bf16.msra.mxu0 %v2816_v3  ;;  %2441 = vmatpush3.bf16.msra.mxu1 %v2853_v9 }
 0x12c   :  { %719 = vmatprep.subr.bf16.mxu0 %v2824_v4  ;;  %2442 = vmatprep.subr.bf16.mxu1 %v2781_v1 }
 0x12d   :  { %749 = vmatprep.mubr.bf16.mxu0 %v2782_v2  ;;  %2456 = vmatprep.mubr.msk.bf16.mxu1 %vm2783_vm0, %v2781_v1 }
 0x12f   :  { %720 = vmatpush1.bf16.msra.mxu0 %v2830_v5  ;;  %2443 = vmatpush3.bf16.msra.mxu1 %v2871_v12 }
 0x130   :  { %721 = vmatprep.subr.bf16.mxu0 %v2836_v6  ;;  %2444 = vmatprep.subr.bf16.mxu1 %v2781_v1 }
 0x133   :  { %722 = vmatpush1.bf16.msra.mxu0 %v2842_v7  ;;  %2445 = vmatpush3.bf16.msra.mxu1 %v2890_v15 }
 0x134   :  { %723 = vmatprep.subr.bf16.mxu0 %v2848_v8  ;;  %2446 = vmatprep.subr.bf16.mxu1 %v2781_v1 }
 0x137   :  { %724 = vmatpush1.bf16.msra.mxu0 %v2859_v10  ;;  %2447 = vmatpush3.bf16.msra.mxu1 %v2909_v18 }
 0x138   :  { %725 = vmatprep.subr.bf16.mxu0 %v2865_v11  ;;  %2448 = vmatprep.subr.bf16.mxu1 %v2781_v1 }
 0x13b   :  { %726 = vmatpush1.bf16.msra.mxu0 %v2877_v13  ;;  %2449 = vmatpush3.bf16.msra.mxu1 %v2928_v21 }
 0x13c   :  { %727 = vmatprep.subr.bf16.mxu0 %v2883_v14  ;;  %2450 = vmatprep.subr.bf16.mxu1 %v2781_v1 }
 0x13f   :  { %728 = vmatpush1.bf16.msra.mxu0 %v2897_v16  ;;  %2451 = vmatpush3.bf16.msra.mxu1 %v2944_v24 }
 0x140   :  { %729 = vmatprep.subr.bf16.mxu0 %v2903_v17  ;;  %2452 = vmatprep.subr.bf16.mxu1 %v2781_v1 }
 0x143   :  { %730 = vmatpush1.bf16.msra.mxu0 %v2916_v19  ;;  %2453 = vmatpush3.bf16.msra.mxu1 %v2954_v26 }
 0x144   :  { %731 = vmatprep.subr.bf16.mxu0 %v2922_v20  ;;  %2454 = vmatprep.subr.bf16.mxu1 %v2781_v1 }
 0x147   :  { %732 = vmatpush1.bf16.msra.mxu0 %v2935_v22  ;;  %2455 = vmatpush3.bf16.msra.mxu1 %v2964_v27 }
 0x148   :  { %964 = vmatprep.subr.bf16.mxu0 %v2808_v0  ;;  %2460 = vmatprep.subr.bf16.mxu1 %v2781_v1 }
 0x1ea   :  { %v504_v38 = vpop.f32.mrf.mxu0  ;;  %v545_v39 = vpop.f32.mrf.mxu1 }
 0x1eb   :  { %v558_v40 = vrot.slane %v504_v38, %v3005_v33  ;;  %v635_v37 = vadd.f32 %v3022_v63, %v545_v39 }
 0x1ec   :  { %v506_v43 = vpop.f32.mrf.mxu0  ;;  %v2438_v44 = vpop.f32.mrf.mxu1 }
 0x1ed   :  { %v559_v45 = vcombine.high %v558_v40, %v558_v40  ;;  %v566_v46 = vrot.slane %v558_v40, %v3005_v33  ;;  %v603_v47 = vrot.slane %v506_v43, %v3005_v33  ;;  %v643_v38 = vrot.slane %v635_v37, %v3005_v33 }
 0x1ee   :  { %v508_v49 = vpop.f32.mrf.mxu0  ;;  %v548_v50 = vpop.f32.mrf.mxu1 }
 0x1ef   :  { %v573_v51 = vrot.slane %v559_v45, %v3005_v33  ;;  %v576_v52 = vadd.f32 %v2278_v42, %v566_v46  ;;  %v604_v53 = vcombine.high %v603_v47, %v603_v47  ;;  %v611_v57 = vrot.slane %v603_v47, %v3005_v33 }
 0x1f0   :  { %v509_v36 = vpop.f32.mrf.mxu0  ;;  %v2439_v54 = vpop.f32.mrf.mxu1  ;;  %v644_v44 = vcombine.high %v643_v38, %v643_v38  ;;  %v663_v46 = vrot.slane %v2278_v42, 2  ;;  %v651_v47 = vrot.slane %v643_v38, %v3005_v33 }
 0x1f1   :  { %v577_v55 = vadd.f32 %v2280_v48, %v573_v51  ;;  %v2281_v41 = vmul.f32 -1.442695, %v576_v52  ;;  %v618_v60 = vrot.slane %v604_v53, %v3005_v33  ;;  %v621_v61 = vadd.f32 %v611_v57, %v592_v56 }
 0x1f2   :  { %v664_v51 = vrot.slane %v2280_v48, 2  ;;  %v658_v52 = vrot.slane %v644_v44, %v3005_v33 }
 0x1f3   :  { %2616 = vpow2.f32 %v2281_v41  ;;  %v2282_v58 = vmul.f32 -1.442695, %v577_v55  ;;  %v622_v62 = vadd.f32 %v618_v60, %v593_v59  ;;  %v2283_v23 = vmul.f32 -1.442695, %v621_v61 }
 0x1f5   :  { %2618 = vpow2.f32 %v2282_v58  ;;  %v2284_v29 = vmul.f32 -1.442695, %v622_v62 }
 0x1f6   :  { %2620 = vpow2.f32 %v2283_v23 }
 0x1f7   :  { %2622 = vpow2.f32 %v2284_v29 }
 0x200   :  { %v2617_v30 = vpop.eup %2616 }
 0x201   :  { %v584_v32 = vadd.f32 1.0, %v2617_v30 }
 0x202   :  { %v2619_v34 = vpop.eup %2618 }
 0x203   :  { %v585_v35 = vadd.f32 1.0, %v2619_v34  ;;  %2624 = vrcp.f32 %v584_v32  ;;  %v2621_v40 = vpop.eup %2620 }
 0x204   :  { %v2623_v43 = vpop.eup %2622  ;;  %v629_v45 = vadd.f32 1.0, %v2621_v40 }
 0x205   :  { %2626 = vrcp.f32 %v585_v35  ;;  %v630_v49 = vadd.f32 1.0, %v2623_v43 }
 0x206   :  { %2628 = vrcp.f32 %v629_v45 }
 0x207   :  { %2630 = vrcp.f32 %v630_v49 }
 0x210   :  { %v2625_v50 = vpop.eup %2624 }
 0x211   :  { %v661_v53 = vmul.f32 %v2625_v50, %v651_v47 }
 0x212   :  { %v2627_v36 = vpop.eup %2626 }
 0x213   :  { %v662_v54 = vmul.f32 %v2627_v36, %v658_v52  ;;  %v667_v55 = vadd.f32 %v663_v46, %v661_v53  ;;  %v2629_v41 = vpop.eup %2628  ;;  %v2285_v46 = vld [vmem:[%s3605_s0 + $0x2] ss:$8 sm:$0x7] }
 0x214   :  { %v2631_v56 = vpop.eup %2630  ;;  %v671_v57 = vsub.f32 1.0, %v2629_v41  ;;  %v675_v60 = vmul.f32 %v2629_v41, %v3032_v25  ;;  %v2287_v53 = vld [vmem:[%s3605_s0 + $0x1a] ss:$8 sm:$0x7] }
 0x215   :  { %v668_v39 = vadd.f32 %v664_v51, %v662_v54  ;;  %2632 = vtanh.f32 %v667_v55  ;;  %v672_v58 = vsub.f32 1.0, %v2631_v56  ;;  %v676_v62 = vmul.f32 %v2631_v56, %v3034_v28 }
 0x217   :  { %2634 = vtanh.f32 %v668_v39 }
 0x222   :  { %v2633_v42 = vpop.eup %2632 }
 0x223   :  { %v673_v59 = vmul.f32 %v2633_v42, %v671_v57 }
 0x224   :  { %v2635_v48 = vpop.eup %2634 }
 0x225   :  { %v674_v61 = vmul.f32 %v2635_v48, %v672_v58  ;;  %v3094_v23 = vadd.f32 %v675_v60, %v673_v59  ;;  %v839_v59 = vrot.slane %v2285_v46, 1 }
 0x227   :  { %v3096_v29 = vadd.f32 %v676_v62, %v674_v61  ;;  %v707_v30 = vpack.c.bf16 %v3094_v23, %v3094_v23  ;;  %v840_v61 = vrot.slane %v2287_v53, 1 }
 0x229   :  { %v708_v32 = vpack.c.bf16 %v3096_v29, %v3096_v29  ;;  %v711_v35 = vunpack.c.l.b16 %v707_v30 }
 0x22b   :  { %v712_v34 = vunpack.c.l.b16 %v708_v32 }
 0x22d   :  { %v713_v37 = vrot.slane %v712_v34, 7 }
 0x22f   :  { %v714_v38 = vsel %vm466_vm1, %v713_v37, %v711_v35 }
 0x230   :  { %v715_v40 = vpack.c.b16 %v714_v38, %v714_v38 }
 0x232   :  { %750 = vmatmul.mubr.bf16.vlgmr.msra.gmra.mxu0 %v715_v40  ;;  %2457 = vmatmul.mubr.bf16.vlgmr.msra.gmra.mxu1 %v715_v40 }
 0x233   :  { %965 = vmatpush1.bf16.msra.mxu0 %v2816_v3  ;;  %2461 = vmatpush3.bf16.msra.mxu1 %v2853_v9 }
 0x234   :  { %966 = vmatprep.subr.bf16.mxu0 %v2824_v4  ;;  %2462 = vmatprep.subr.bf16.mxu1 %v2781_v1 }
 0x235   :  { %996 = vmatprep.mubr.bf16.mxu0 %v2782_v2  ;;  %2476 = vmatprep.mubr.msk.bf16.mxu1 %vm2783_vm0, %v2781_v1 }
 0x237   :  { %967 = vmatpush1.bf16.msra.mxu0 %v2830_v5  ;;  %2463 = vmatpush3.bf16.msra.mxu1 %v2871_v12 }
 0x238   :  { %968 = vmatprep.subr.bf16.mxu0 %v2836_v6  ;;  %2464 = vmatprep.subr.bf16.mxu1 %v2781_v1 }
 0x23b   :  { %969 = vmatpush1.bf16.msra.mxu0 %v2842_v7  ;;  %2465 = vmatpush3.bf16.msra.mxu1 %v2890_v15 }
 0x23c   :  { %970 = vmatprep.subr.bf16.mxu0 %v2848_v8  ;;  %2466 = vmatprep.subr.bf16.mxu1 %v2781_v1 }
 0x23f   :  { %971 = vmatpush1.bf16.msra.mxu0 %v2859_v10  ;;  %2467 = vmatpush3.bf16.msra.mxu1 %v2909_v18 }
 0x240   :  { %972 = vmatprep.subr.bf16.mxu0 %v2865_v11  ;;  %2468 = vmatprep.subr.bf16.mxu1 %v2781_v1 }
 0x243   :  { %973 = vmatpush1.bf16.msra.mxu0 %v2877_v13  ;;  %2469 = vmatpush3.bf16.msra.mxu1 %v2928_v21 }
 0x244   :  { %974 = vmatprep.subr.bf16.mxu0 %v2883_v14  ;;  %2470 = vmatprep.subr.bf16.mxu1 %v2781_v1 }
 0x247   :  { %975 = vmatpush1.bf16.msra.mxu0 %v2897_v16  ;;  %2471 = vmatpush3.bf16.msra.mxu1 %v2944_v24 }
 0x248   :  { %976 = vmatprep.subr.bf16.mxu0 %v2903_v17  ;;  %2472 = vmatprep.subr.bf16.mxu1 %v2781_v1 }
 0x24b   :  { %977 = vmatpush1.bf16.msra.mxu0 %v2916_v19  ;;  %2473 = vmatpush3.bf16.msra.mxu1 %v2954_v26 }
 0x24c   :  { %978 = vmatprep.subr.bf16.mxu0 %v2922_v20  ;;  %2474 = vmatprep.subr.bf16.mxu1 %v2781_v1 }
 0x24f   :  { %979 = vmatpush1.bf16.msra.mxu0 %v2935_v22  ;;  %2475 = vmatpush3.bf16.msra.mxu1 %v2964_v27 }
 0x250   :  { %1211 = vmatprep.subr.bf16.mxu0 %v2808_v0  ;;  %2480 = vmatprep.subr.bf16.mxu1 %v2781_v1 }
 0x2f2   :  { %v751_v43 = vpop.f32.mrf.mxu0  ;;  %v792_v44 = vpop.f32.mrf.mxu1 }
 0x2f3   :  { %v805_v45 = vrot.slane %v751_v43, %v3005_v33 }
 0x2f4   :  { %v753_v47 = vpop.f32.mrf.mxu0  ;;  %v2458_v49 = vpop.f32.mrf.mxu1 }
 0x2f5   :  { %v806_v50 = vcombine.high %v805_v45, %v805_v45  ;;  %v813_v51 = vrot.slane %v805_v45, %v3005_v33  ;;  %v850_v52 = vrot.slane %v753_v47, %v3005_v33  ;;  %v882_v45 = vadd.f32 %v3022_v63, %v792_v44 }
 0x2f6   :  { %v755_v36 = vpop.f32.mrf.mxu0  ;;  %v795_v54 = vpop.f32.mrf.mxu1 }
 0x2f7   :  { %v820_v55 = vrot.slane %v806_v50, %v3005_v33  ;;  %v823_v39 = vadd.f32 %v2285_v46, %v813_v51  ;;  %v851_v41 = vcombine.high %v850_v52, %v850_v52  ;;  %v858_v60 = vrot.slane %v850_v52, %v3005_v33 }
 0x2f8   :  { %v756_v56 = vpop.f32.mrf.mxu0  ;;  %v2459_v57 = vpop.f32.mrf.mxu1  ;;  %v890_v47 = vrot.slane %v882_v45, %v3005_v33  ;;  %v910_v36 = vrot.slane %v2285_v46, 2 }
 0x2f9   :  { %v824_v42 = vadd.f32 %v2287_v53, %v820_v55  ;;  %v2288_v58 = vmul.f32 -1.442695, %v823_v39  ;;  %v865_v62 = vrot.slane %v851_v41, %v3005_v33  ;;  %v868_v30 = vadd.f32 %v858_v60, %v839_v59 }
 0x2fa   :  { %v891_v51 = vcombine.high %v890_v47, %v890_v47  ;;  %v898_v54 = vrot.slane %v890_v47, %v3005_v33  ;;  %v911_v41 = vrot.slane %v2287_v53, 2 }
 0x2fb   :  { %2636 = vpow2.f32 %v2288_v58  ;;  %v2289_v48 = vmul.f32 -1.442695, %v824_v42  ;;  %v869_v32 = vadd.f32 %v865_v62, %v840_v61  ;;  %v2290_v34 = vmul.f32 -1.442695, %v868_v30 }
 0x2fc   :  { %v905_v56 = vrot.slane %v891_v51, %v3005_v33 }
 0x2fd   :  { %2638 = vpow2.f32 %v2289_v48  ;;  %v2291_v35 = vmul.f32 -1.442695, %v869_v32 }
 0x2fe   :  { %2640 = vpow2.f32 %v2290_v34 }
 0x2ff   :  { %2642 = vpow2.f32 %v2291_v35 }
 0x308   :  { %v2637_v37 = vpop.eup %2636 }
 0x309   :  { %v831_v38 = vadd.f32 1.0, %v2637_v37 }
 0x30a   :  { %v2639_v40 = vpop.eup %2638 }
 0x30b   :  { %v832_v43 = vadd.f32 1.0, %v2639_v40  ;;  %2644 = vrcp.f32 %v831_v38  ;;  %v2641_v49 = vpop.eup %2640 }
 0x30c   :  { %v2643_v50 = vpop.eup %2642  ;;  %v876_v52 = vadd.f32 1.0, %v2641_v49 }
 0x30d   :  { %2646 = vrcp.f32 %v832_v43  ;;  %v877_v55 = vadd.f32 1.0, %v2643_v50 }
 0x30e   :  { %2648 = vrcp.f32 %v876_v52 }
 0x30f   :  { %2650 = vrcp.f32 %v877_v55 }
 0x318   :  { %v2645_v39 = vpop.eup %2644 }
 0x319   :  { %v908_v57 = vmul.f32 %v2645_v39, %v898_v54 }
 0x31a   :  { %v2647_v42 = vpop.eup %2646 }
 0x31b   :  { %v909_v58 = vmul.f32 %v2647_v42, %v905_v56  ;;  %v914_v59 = vadd.f32 %v910_v36, %v908_v57  ;;  %v2649_v60 = vpop.eup %2648 }
 0x31c   :  { %v2651_v48 = vpop.eup %2650  ;;  %v918_v61 = vsub.f32 1.0, %v2649_v60  ;;  %v922_v32 = vmul.f32 %v2649_v60, %v3094_v23 }
 0x31d   :  { %v915_v44 = vadd.f32 %v911_v41, %v909_v58  ;;  %2652 = vtanh.f32 %v914_v59  ;;  %v919_v62 = vsub.f32 1.0, %v2651_v48  ;;  %v923_v35 = vmul.f32 %v2651_v48, %v3096_v29 }
 0x31f   :  { %2654 = vtanh.f32 %v915_v44 }
 0x32a   :  { %v2653_v46 = vpop.eup %2652 }
 0x32b   :  { %v920_v30 = vmul.f32 %v2653_v46, %v918_v61 }
 0x32c   :  { %v2655_v53 = vpop.eup %2654 }
 0x32d   :  { %v921_v34 = vmul.f32 %v2655_v53, %v919_v62  ;;  %v3156_v37 = vadd.f32 %v922_v32, %v920_v30 }
 0x32f   :  { %v3158_v38 = vadd.f32 %v923_v35, %v921_v34  ;;  %v954_v40 = vpack.c.bf16 %v3156_v37, %v3156_v37 }
 0x331   :  { %v955_v43 = vpack.c.bf16 %v3158_v38, %v3158_v38  ;;  %v958_v47 = vunpack.c.l.b16 %v954_v40 }
 0x333   :  { %v959_v45 = vunpack.c.l.b16 %v955_v43 }
 0x335   :  { %v960_v49 = vrot.slane %v959_v45, 7 }
 0x337   :  { %v961_v50 = vsel %vm466_vm1, %v960_v49, %v958_v47 }
 0x338   :  { %v962_v51 = vpack.c.b16 %v961_v50, %v961_v50 }
 0x33a   :  { %997 = vmatmul.mubr.bf16.vlgmr.msra.gmra.mxu0 %v962_v51  ;;  %2477 = vmatmul.mubr.bf16.vlgmr.msra.gmra.mxu1 %v962_v51 }
 0x33b   :  { %1212 = vmatpush1.bf16.msra.mxu0 %v2816_v3  ;;  %2481 = vmatpush3.bf16.msra.mxu1 %v2853_v9 }
 0x33c   :  { %1213 = vmatprep.subr.bf16.mxu0 %v2824_v4  ;;  %2482 = vmatprep.subr.bf16.mxu1 %v2781_v1 }
 0x33d   :  { %1243 = vmatprep.mubr.bf16.mxu0 %v2782_v2  ;;  %2496 = vmatprep.mubr.msk.bf16.mxu1 %vm2783_vm0, %v2781_v1 }
 0x33f   :  { %1214 = vmatpush1.bf16.msra.mxu0 %v2830_v5  ;;  %2483 = vmatpush3.bf16.msra.mxu1 %v2871_v12 }
 0x340   :  { %1215 = vmatprep.subr.bf16.mxu0 %v2836_v6  ;;  %2484 = vmatprep.subr.bf16.mxu1 %v2781_v1  ;;  %v2292_v6 = vld [vmem:[%s3605_s0 + $0x3] ss:$8 sm:$0x7] }
 0x341   :  { %v1157_v32 = vrot.slane %v2292_v6, 2 }
 0x343   :  { %1216 = vmatpush1.bf16.msra.mxu0 %v2842_v7  ;;  %2485 = vmatpush3.bf16.msra.mxu1 %v2890_v15 }
 0x344   :  { %1217 = vmatprep.subr.bf16.mxu0 %v2848_v8  ;;  %2486 = vmatprep.subr.bf16.mxu1 %v2781_v1 }
 0x347   :  { %1218 = vmatpush1.bf16.msra.mxu0 %v2859_v10  ;;  %2487 = vmatpush3.bf16.msra.mxu1 %v2909_v18 }
 0x348   :  { %1219 = vmatprep.subr.bf16.mxu0 %v2865_v11  ;;  %2488 = vmatprep.subr.bf16.mxu1 %v2781_v1 }
 0x34b   :  { %1220 = vmatpush1.bf16.msra.mxu0 %v2877_v13  ;;  %2489 = vmatpush3.bf16.msra.mxu1 %v2928_v21 }
 0x34c   :  { %1221 = vmatprep.subr.bf16.mxu0 %v2883_v14  ;;  %2490 = vmatprep.subr.bf16.mxu1 %v2781_v1 }
 0x34f   :  { %1222 = vmatpush1.bf16.msra.mxu0 %v2897_v16  ;;  %2491 = vmatpush3.bf16.msra.mxu1 %v2944_v24 }
 0x350   :  { %1223 = vmatprep.subr.bf16.mxu0 %v2903_v17  ;;  %2492 = vmatprep.subr.bf16.mxu1 %v2781_v1 }
 0x353   :  { %1224 = vmatpush1.bf16.msra.mxu0 %v2916_v19  ;;  %2493 = vmatpush3.bf16.msra.mxu1 %v2954_v26 }
 0x354   :  { %1225 = vmatprep.subr.bf16.mxu0 %v2922_v20  ;;  %2494 = vmatprep.subr.bf16.mxu1 %v2781_v1 }
 0x357   :  { %1226 = vmatpush1.bf16.msra.mxu0 %v2935_v22  ;;  %2495 = vmatpush3.bf16.msra.mxu1 %v2964_v27  ;;  %v1086_v22 = vrot.slane %v2292_v6, 1 }
 0x358   :  { %1458 = vmatprep.subr.bf16.mxu0 %v2808_v0  ;;  %2500 = vmatprep.subr.bf16.mxu1 %v2781_v1  ;;  %v2294_v0 = vld [vmem:[%s3605_s0 + $0x1b] ss:$8 sm:$0x7] }
 0x359   :  { %v1087_v54 = vrot.slane %v2294_v0, 1  ;;  %v1158_v40 = vrot.slane %v2294_v0, 2 }
 0x3fa   :  { %v998_v3 = vpop.f32.mrf.mxu0  ;;  %v1039_v4 = vpop.f32.mrf.mxu1 }
 0x3fb   :  { %v1052_v5 = vrot.slane %v998_v3, %v3005_v33  ;;  %v1129_v60 = vadd.f32 %v3022_v63, %v1039_v4 }
 0x3fc   :  { %v1000_v7 = vpop.f32.mrf.mxu0  ;;  %v2478_v8 = vpop.f32.mrf.mxu1 }
 0x3fd   :  { %v1053_v9 = vcombine.high %v1052_v5, %v1052_v5  ;;  %v1060_v10 = vrot.slane %v1052_v5, %v3005_v33  ;;  %v1097_v11 = vrot.slane %v1000_v7, %v3005_v33  ;;  %v1137_v48 = vrot.slane %v1129_v60, %v3005_v33  ;;  %v3316_v60 = vld [vmem:[%s3604_s1 + $0x34] ss:$12 sps:$4 sm:$0xff]  }
 0x3fe   :  { %v1002_v12 = vpop.f32.mrf.mxu0  ;;  %v1042_v13 = vpop.f32.mrf.mxu1 }
 0x3ff   :  { %v1067_v14 = vrot.slane %v1053_v9, %v3005_v33  ;;  %v1070_v15 = vadd.f32 %v2292_v6, %v1060_v10  ;;  %v1098_v16 = vcombine.high %v1097_v11, %v1097_v11  ;;  %v1105_v52 = vrot.slane %v1097_v11, %v3005_v33 }
 0x400   :  { %v1003_v17 = vpop.f32.mrf.mxu0  ;;  %v2479_v18 = vpop.f32.mrf.mxu1  ;;  %v1138_v62 = vcombine.high %v1137_v48, %v1137_v48  ;;  %v1145_v53 = vrot.slane %v1137_v48, %v3005_v33  ;;  %v3323_v48 = vld [vmem:[%s3604_s1 + $0x30] ss:$12 sps:$4 sm:$0xff]  }
 0x401   :  { %v1071_v19 = vadd.f32 %v2294_v0, %v1067_v14  ;;  %v2295_v20 = vmul.f32 -1.442695, %v1070_v15  ;;  %v1112_v55 = vrot.slane %v1098_v16, %v3005_v33  ;;  %v1115_v39 = vadd.f32 %v1105_v52, %v1086_v22  ;;  %v3230_v22 = vld [vmem:[%s3604_s1 + $0xa8] ss:$12 sps:$4 sm:$0xff]   ;;  %v3236_v52 = vld [vmem:[%s3604_s1 + $0xb0] ss:$12 sps:$4 sm:$0xff]  }
 0x402   :  { %v1152_v43 = vrot.slane %v1138_v62, %v3005_v33 }
 0x403   :  { %2656 = vpow2.f32 %v2295_v20  ;;  %v2296_v36 = vmul.f32 -1.442695, %v1071_v19  ;;  %v1116_v41 = vadd.f32 %v1112_v55, %v1087_v54  ;;  %v2297_v56 = vmul.f32 -1.442695, %v1115_v39  ;;  %v3252_v54 = vld [vmem:[%s3604_s1 + $0x90] ss:$12 sps:$4 sm:$0xff]  }
 0x404   :  { %v3258_v55 = vld [vmem:[%s3604_s1 + $0x98] ss:$12 sps:$4 sm:$0xff]   ;;  %v3264_v39 = vld [vmem:[%s3604_s1 + $0x7c] ss:$12 sps:$4 sm:$0xff]  }
 0x405   :  { %2658 = vpow2.f32 %v2296_v36  ;;  %v2298_v57 = vmul.f32 -1.442695, %v1116_v41  ;;  %v3242_v36 = vld [vmem:[%s3604_s1 + $0x94] ss:$12 sps:$4 sm:$0xff]   ;;  %v3271_v41 = vld [vmem:[%s3604_s1 + $0x78] ss:$12 sps:$4 sm:$0xff]  }
 0x406   :  { %2660 = vpow2.f32 %v2297_v56  ;;  %v3277_v56 = vld [vmem:[%s3604_s1 + $0x80] ss:$12 sps:$4 sm:$0xff]  }
 0x407   :  { %2662 = vpow2.f32 %v2298_v57  ;;  %v3283_v57 = vld [vmem:[%s3604_s1 + $0x64] ss:$12 sps:$4 sm:$0xff]  }
 0x410   :  { %v2657_v42 = vpop.eup %2656 }
 0x411   :  { %v1078_v58 = vadd.f32 1.0, %v2657_v42  ;;  %v3290_v42 = vld [vmem:[%s3604_s1 + $0x60] ss:$12 sps:$4 sm:$0xff]  }
 0x412   :  { %v2659_v59 = vpop.eup %2658 }
 0x413   :  { %v1079_v44 = vadd.f32 1.0, %v2659_v59  ;;  %2664 = vrcp.f32 %v1078_v58  ;;  %v2661_v61 = vpop.eup %2660  ;;  %v3296_v58 = vld [vmem:[%s3604_s1 + $0x68] ss:$12 sps:$4 sm:$0xff]   ;;  %v3302_v59 = vld [vmem:[%s3604_s1 + $0x4c] ss:$12 sps:$4 sm:$0xff]  }
 0x414   :  { %v2663_v46 = vpop.eup %2662  ;;  %v1123_v30 = vadd.f32 1.0, %v2661_v61  ;;  %v3337_v61 = vld [vmem:[%s3604_s1 + $0x18] ss:$12 sps:$4 sm:$0xff]  }
 0x415   :  { %2666 = vrcp.f32 %v1079_v44  ;;  %v1124_v34 = vadd.f32 1.0, %v2663_v46  ;;  %v3309_v44 = vld [vmem:[%s3604_s1 + $0x48] ss:$12 sps:$4 sm:$0xff]   ;;  %v3351_v46 = vld [vmem:[%s3604_s1] ss:$12 sps:$4 sm:$0xff]  }
 0x416   :  { %2668 = vrcp.f32 %v1123_v30 }
 0x417   :  { %2670 = vrcp.f32 %v1124_v34 }
 0x420   :  { %v2665_v35 = vpop.eup %2664 }
 0x421   :  { %v1155_v45 = vmul.f32 %v2665_v35, %v1145_v53  ;;  %v2299_v53 = vld [vmem:[%s3605_s0 + $0x4] ss:$8 sm:$0x7] }
 0x422   :  { %v2667_v47 = vpop.eup %2666 }
 0x423   :  { %v1156_v49 = vmul.f32 %v2667_v47, %v1152_v43  ;;  %v1161_v50 = vadd.f32 %v1157_v32, %v1155_v45  ;;  %v2669_v3 = vpop.eup %2668  ;;  %v2301_v45 = vld [vmem:[%s3605_s0 + $0x1c] ss:$8 sm:$0x7] }
 0x424   :  { %v2671_v4 = vpop.eup %2670  ;;  %v1165_v5 = vsub.f32 1.0, %v2669_v3  ;;  %v1169_v9 = vmul.f32 %v2669_v3, %v3156_v37 }
 0x425   :  { %v1162_v51 = vadd.f32 %v1158_v40, %v1156_v49  ;;  %2672 = vtanh.f32 %v1161_v50  ;;  %v1166_v7 = vsub.f32 1.0, %v2671_v4  ;;  %v1170_v0 = vmul.f32 %v2671_v4, %v3158_v38 }
 0x427   :  { %2674 = vtanh.f32 %v1162_v51 }
 0x432   :  { %v2673_v6 = vpop.eup %2672 }
 0x433   :  { %v1167_v8 = vmul.f32 %v2673_v6, %v1165_v5 }
 0x434   :  { %v2675_v10 = vpop.eup %2674 }
 0x435   :  { %v1168_v11 = vmul.f32 %v2675_v10, %v1166_v7  ;;  %v3218_v12 = vadd.f32 %v1169_v9, %v1167_v8  ;;  %v1333_v8 = vrot.slane %v2299_v53, 1 }
 0x437   :  { %v3220_v13 = vadd.f32 %v1170_v0, %v1168_v11  ;;  %v1201_v14 = vpack.c.bf16 %v3218_v12, %v3218_v12  ;;  %v1334_v11 = vrot.slane %v2301_v45, 1 }
 0x439   :  { %v1202_v15 = vpack.c.bf16 %v3220_v13, %v3220_v13  ;;  %v1205_v17 = vunpack.c.l.b16 %v1201_v14 }
 0x43b   :  { %v1206_v16 = vunpack.c.l.b16 %v1202_v15 }
 0x43d   :  { %v1207_v18 = vrot.slane %v1206_v16, 7 }
 0x43f   :  { %v1208_v19 = vsel %vm466_vm1, %v1207_v18, %v1205_v17 }
 0x440   :  { %v1209_v20 = vpack.c.b16 %v1208_v19, %v1208_v19 }
 0x442   :  { %1244 = vmatmul.mubr.bf16.vlgmr.msra.gmra.mxu0 %v1209_v20  ;;  %2497 = vmatmul.mubr.bf16.vlgmr.msra.gmra.mxu1 %v1209_v20 }
 0x443   :  { %1459 = vmatpush1.bf16.msra.mxu0 %v3230_v22  ;;  %2501 = vmatpush3.bf16.msra.mxu1 %v3236_v52 }
 0x444   :  { %1460 = vmatprep.subr.bf16.mxu0 %v3242_v36  ;;  %2502 = vmatprep.subr.bf16.mxu1 %v2781_v1 }
 0x445   :  { %1490 = vmatprep.mubr.bf16.mxu0 %v2782_v2  ;;  %2516 = vmatprep.mubr.msk.bf16.mxu1 %vm2783_vm0, %v2781_v1 }
 0x447   :  { %1461 = vmatpush1.bf16.msra.mxu0 %v3252_v54  ;;  %2503 = vmatpush3.bf16.msra.mxu1 %v3258_v55 }
 0x448   :  { %1462 = vmatprep.subr.bf16.mxu0 %v3264_v39  ;;  %2504 = vmatprep.subr.bf16.mxu1 %v2781_v1 }
 0x44b   :  { %1463 = vmatpush1.bf16.msra.mxu0 %v3271_v41  ;;  %2505 = vmatpush3.bf16.msra.mxu1 %v3277_v56 }
 0x44c   :  { %1464 = vmatprep.subr.bf16.mxu0 %v3283_v57  ;;  %2506 = vmatprep.subr.bf16.mxu1 %v2781_v1 }
 0x44f   :  { %1465 = vmatpush1.bf16.msra.mxu0 %v3290_v42  ;;  %2507 = vmatpush3.bf16.msra.mxu1 %v3296_v58 }
 0x450   :  { %1466 = vmatprep.subr.bf16.mxu0 %v3302_v59  ;;  %2508 = vmatprep.subr.bf16.mxu1 %v2781_v1 }
 0x453   :  { %1467 = vmatpush1.bf16.msra.mxu0 %v3309_v44  ;;  %2509 = vmatpush3.bf16.msra.mxu1 %v2928_v21  ;;  %v3330_v21 = vld [vmem:[%s3604_s1 + $0x1c] ss:$12 sps:$4 sm:$0xff]  }
 0x454   :  { %1468 = vmatprep.subr.bf16.mxu0 %v3316_v60  ;;  %2510 = vmatprep.subr.bf16.mxu1 %v2781_v1 }
 0x457   :  { %1469 = vmatpush1.bf16.msra.mxu0 %v3323_v48  ;;  %2511 = vmatpush3.bf16.msra.mxu1 %v2944_v24  ;;  %v3344_v24 = vld [vmem:[%s3604_s1 + $0x4] ss:$12 sps:$4 sm:$0xff]  }
 0x458   :  { %1470 = vmatprep.subr.bf16.mxu0 %v3330_v21  ;;  %2512 = vmatprep.subr.bf16.mxu1 %v2781_v1 }
 0x45b   :  { %1471 = vmatpush1.bf16.msra.mxu0 %v3337_v61  ;;  %2513 = vmatpush3.bf16.msra.mxu1 %v2954_v26  ;;  %v3358_v26 = vld [vmem:[%s3604_s1 + $0xac] ss:$12 sps:$4 sm:$0xff]  }
 0x45c   :  { %1472 = vmatprep.subr.bf16.mxu0 %v3344_v24  ;;  %2514 = vmatprep.subr.bf16.mxu1 %v2781_v1 }
 0x45f   :  { %1473 = vmatpush1.bf16.msra.mxu0 %v3351_v46  ;;  %2515 = vmatpush3.bf16.msra.mxu1 %v2964_v27 }
 0x460   :  { %1705 = vmatprep.subr.bf16.mxu0 %v3358_v26  ;;  %2520 = vmatprep.subr.bf16.mxu1 %v2781_v1 }
 0x502   :  { %v1245_v62 = vpop.f32.mrf.mxu0  ;;  %v1286_v30 = vpop.f32.mrf.mxu1 }
 0x503   :  { %v1299_v32 = vrot.slane %v1245_v62, %v3005_v33 }
 0x504   :  { %v1247_v34 = vpop.f32.mrf.mxu0  ;;  %v2498_v35 = vpop.f32.mrf.mxu1 }
 0x505   :  { %v1300_v27 = vcombine.high %v1299_v32, %v1299_v32  ;;  %v1307_v40 = vrot.slane %v1299_v32, %v3005_v33  ;;  %v1344_v43 = vrot.slane %v1247_v34, %v3005_v33  ;;  %v1376_v32 = vadd.f32 %v3022_v63, %v1286_v30 }
 0x506   :  { %v1249_v47 = vpop.f32.mrf.mxu0  ;;  %v1289_v49 = vpop.f32.mrf.mxu1 }
 0x507   :  { %v1314_v50 = vrot.slane %v1300_v27, %v3005_v33  ;;  %v1317_v51 = vadd.f32 %v2299_v53, %v1307_v40  ;;  %v1345_v3 = vcombine.high %v1344_v43, %v1344_v43  ;;  %v1352_v9 = vrot.slane %v1344_v43, %v3005_v33 }
 0x508   :  { %v1250_v4 = vpop.f32.mrf.mxu0  ;;  %v2499_v5 = vpop.f32.mrf.mxu1  ;;  %v1384_v34 = vrot.slane %v1376_v32, %v3005_v33  ;;  %v1404_v47 = vrot.slane %v2299_v53, 2 }
 0x509   :  { %v1318_v6 = vadd.f32 %v2301_v45, %v1314_v50  ;;  %v2302_v7 = vmul.f32 -1.442695, %v1317_v51  ;;  %v1359_v0 = vrot.slane %v1345_v3, %v3005_v33  ;;  %v1362_v14 = vadd.f32 %v1352_v9, %v1333_v8 }
 0x50a   :  { %v1385_v40 = vcombine.high %v1384_v34, %v1384_v34  ;;  %v1392_v49 = vrot.slane %v1384_v34, %v3005_v33  ;;  %v1405_v3 = vrot.slane %v2301_v45, 2 }
 0x50b   :  { %2676 = vpow2.f32 %v2302_v7  ;;  %v2303_v10 = vmul.f32 -1.442695, %v1318_v6  ;;  %v1363_v15 = vadd.f32 %v1359_v0, %v1334_v11  ;;  %v2304_v16 = vmul.f32 -1.442695, %v1362_v14 }
 0x50c   :  { %v1399_v4 = vrot.slane %v1385_v40, %v3005_v33  ;;  %v3412_v40 = vld [vmem:[%s3604_s1 + $0x50] ss:$12 sps:$4 sm:$0xff]  }
 0x50d   :  { %2678 = vpow2.f32 %v2303_v10  ;;  %v2305_v17 = vmul.f32 -1.442695, %v1363_v15 }
 0x50e   :  { %2680 = vpow2.f32 %v2304_v16 }
 0x50f   :  { %2682 = vpow2.f32 %v2305_v17 }
 0x518   :  { %v2677_v18 = vpop.eup %2676 }
 0x519   :  { %v1325_v19 = vadd.f32 1.0, %v2677_v18 }
 0x51a   :  { %v2679_v20 = vpop.eup %2678 }
 0x51b   :  { %v1326_v62 = vadd.f32 1.0, %v2679_v20  ;;  %2684 = vrcp.f32 %v1325_v19  ;;  %v2681_v35 = vpop.eup %2680 }
 0x51c   :  { %v2683_v27 = vpop.eup %2682  ;;  %v1370_v43 = vadd.f32 1.0, %v2681_v35 }
 0x51d   :  { %2686 = vrcp.f32 %v1326_v62  ;;  %v1371_v50 = vadd.f32 1.0, %v2683_v27 }
 0x51e   :  { %2688 = vrcp.f32 %v1370_v43  ;;  %v3421_v43 = vld [vmem:[%s3604_s1 + $0x38] ss:$12 sps:$4 sm:$0xff]  }
 0x51f   :  { %2690 = vrcp.f32 %v1371_v50 }
 0x528   :  { %v2685_v51 = vpop.eup %2684 }
 0x529   :  { %v1402_v5 = vmul.f32 %v2685_v51, %v1392_v49  ;;  %v3439_v49 = vld [vmem:[%s3604_s1 + $0x8] ss:$12 sps:$4 sm:$0xff]  }
 0x52a   :  { %v2687_v6 = vpop.eup %2686 }
 0x52b   :  { %v1403_v7 = vmul.f32 %v2687_v6, %v1399_v4  ;;  %v1408_v8 = vadd.f32 %v1404_v47, %v1402_v5  ;;  %v2689_v30 = vpop.eup %2688  ;;  %v3430_v47 = vld [vmem:[%s3604_s1 + $0x20] ss:$12 sps:$4 sm:$0xff]  }
 0x52c   :  { %v2691_v9 = vpop.eup %2690  ;;  %v1412_v10 = vsub.f32 1.0, %v2689_v30  ;;  %v1416_v14 = vmul.f32 %v2689_v30, %v3218_v12  ;;  %v2306_v4 = vld [vmem:[%s3605_s0 + $0x5] ss:$8 sm:$0x7] }
 0x52d   :  { %v1409_v63 = vadd.f32 %v1405_v3, %v1403_v7  ;;  %2692 = vtanh.f32 %v1408_v8  ;;  %v1413_v11 = vsub.f32 1.0, %v2691_v9  ;;  %v1417_v16 = vmul.f32 %v2691_v9, %v3220_v13 }
 0x52f   :  { %2694 = vtanh.f32 %v1409_v63 }
 0x53a   :  { %v2693_v53 = vpop.eup %2692 }
 0x53b   :  { %v1414_v0 = vmul.f32 %v2693_v53, %v1412_v10 }
 0x53c   :  { %v2695_v45 = vpop.eup %2694 }
 0x53d   :  { %v1415_v15 = vmul.f32 %v2695_v45, %v1413_v11  ;;  %v3380_v17 = vadd.f32 %v1416_v14, %v1414_v0 }
 0x53f   :  { %v3382_v18 = vadd.f32 %v1417_v16, %v1415_v15  ;;  %v1448_v19 = vpack.c.bf16 %v3380_v17, %v3380_v17  ;;  %v1580_v16 = vrot.slane %v2306_v4, 1 }
 0x541   :  { %v1449_v20 = vpack.c.bf16 %v3382_v18, %v3382_v18  ;;  %v1452_v32 = vunpack.c.l.b16 %v1448_v19 }
 0x543   :  { %v1453_v62 = vunpack.c.l.b16 %v1449_v20 }
 0x545   :  { %v1454_v34 = vrot.slane %v1453_v62, 7 }
 0x547   :  { %v1455_v35 = vsel %vm466_vm1, %v1454_v34, %v1452_v32 }
 0x548   :  { %v1456_v27 = vpack.c.b16 %v1455_v35, %v1455_v35 }
 0x54a   :  { %1491 = vmatmul.mubr.bf16.vlgmr.msra.gmra.mxu0 %v1456_v27  ;;  %2517 = vmatmul.mubr.bf16.vlgmr.msra.gmra.mxu1 %v1456_v27 }
 0x54b   :  { %1706 = vmatpush1.bf16.msra.mxu0 %v3230_v22  ;;  %2521 = vmatpush3.bf16.msra.mxu1 %v3236_v52 }
 0x54c   :  { %1707 = vmatprep.subr.bf16.mxu0 %v3242_v36  ;;  %2522 = vmatprep.subr.bf16.mxu1 %v2781_v1 }
 0x54d   :  { %1737 = vmatprep.mubr.bf16.mxu0 %v2782_v2  ;;  %2536 = vmatprep.mubr.msk.bf16.mxu1 %vm2783_vm0, %v2781_v1 }
 0x54f   :  { %1708 = vmatpush1.bf16.msra.mxu0 %v3252_v54  ;;  %2523 = vmatpush3.bf16.msra.mxu1 %v3258_v55 }
 0x550   :  { %1709 = vmatprep.subr.bf16.mxu0 %v3264_v39  ;;  %2524 = vmatprep.subr.bf16.mxu1 %v2781_v1 }
 0x553   :  { %1710 = vmatpush1.bf16.msra.mxu0 %v3271_v41  ;;  %2525 = vmatpush3.bf16.msra.mxu1 %v3277_v56 }
 0x554   :  { %1711 = vmatprep.subr.bf16.mxu0 %v3283_v57  ;;  %2526 = vmatprep.subr.bf16.mxu1 %v2781_v1 }
 0x557   :  { %1712 = vmatpush1.bf16.msra.mxu0 %v3290_v42  ;;  %2527 = vmatpush3.bf16.msra.mxu1 %v3296_v58 }
 0x558   :  { %1713 = vmatprep.subr.bf16.mxu0 %v3302_v59  ;;  %2528 = vmatprep.subr.bf16.mxu1 %v2781_v1 }
 0x55b   :  { %1714 = vmatpush1.bf16.msra.mxu0 %v3309_v44  ;;  %2529 = vmatpush3.bf16.msra.mxu1 %v3412_v40 }
 0x55c   :  { %1715 = vmatprep.subr.bf16.mxu0 %v3316_v60  ;;  %2530 = vmatprep.subr.bf16.mxu1 %v2781_v1 }
 0x55f   :  { %1716 = vmatpush1.bf16.msra.mxu0 %v3323_v48  ;;  %2531 = vmatpush3.bf16.msra.mxu1 %v3421_v43 }
 0x560   :  { %1717 = vmatprep.subr.bf16.mxu0 %v3330_v21  ;;  %2532 = vmatprep.subr.bf16.mxu1 %v2781_v1 }
 0x563   :  { %1718 = vmatpush1.bf16.msra.mxu0 %v3337_v61  ;;  %2533 = vmatpush3.bf16.msra.mxu1 %v3430_v47 }
 0x564   :  { %1719 = vmatprep.subr.bf16.mxu0 %v3344_v24  ;;  %2534 = vmatprep.subr.bf16.mxu1 %v2781_v1 }
 0x567   :  { %1720 = vmatpush1.bf16.msra.mxu0 %v3351_v46  ;;  %2535 = vmatpush3.bf16.msra.mxu1 %v3439_v49 }
 0x568   :  { %1952 = vmatprep.subr.bf16.mxu0 %v3358_v26  ;;  %2540 = vmatprep.subr.bf16.mxu1 %v2781_v1  ;;  %v2308_v26 = vld [vmem:[%s3605_s0 + $0x1d] ss:$8 sm:$0x7] }
 0x569   :  { %v1581_v62 = vrot.slane %v2308_v26, 1 }
 0x60a   :  { %v1492_v50 = vpop.f32.mrf.mxu0  ;;  %v1533_v51 = vpop.f32.mrf.mxu1 }
 0x60b   :  { %v1546_v3 = vrot.slane %v1492_v50, %v3005_v33 }
 0x60c   :  { %v1494_v5 = vpop.f32.mrf.mxu0  ;;  %v2518_v6 = vpop.f32.mrf.mxu1 }
 0x60d   :  { %v1547_v7 = vcombine.high %v1546_v3, %v1546_v3  ;;  %v1554_v8 = vrot.slane %v1546_v3, %v3005_v33  ;;  %v1591_v63 = vrot.slane %v1494_v5, %v3005_v33 }
 0x60e   :  { %v1496_v30 = vpop.f32.mrf.mxu0  ;;  %v1536_v9 = vpop.f32.mrf.mxu1 }
 0x60f   :  { %v1561_v10 = vrot.slane %v1547_v7, %v3005_v33  ;;  %v1564_v53 = vadd.f32 %v2306_v4, %v1554_v8  ;;  %v1592_v11 = vcombine.high %v1591_v63, %v1591_v63  ;;  %v1599_v19 = vrot.slane %v1591_v63, %v3005_v33  ;;  %v3459_v8 = vld [vmem:[%s3606_s2] ss:$0 sm:$0xff] }
 0x610   :  { %v1497_v0 = vpop.f32.mrf.mxu0  ;;  %v2519_v14 = vpop.f32.mrf.mxu1  ;;  %v1623_v63 = vadd.f32 %v3459_v8, %v1533_v51 }
 0x611   :  { %v1565_v45 = vadd.f32 %v2308_v26, %v1561_v10  ;;  %v2309_v15 = vmul.f32 -1.442695, %v1564_v53  ;;  %v1606_v32 = vrot.slane %v1592_v11, %v3005_v33  ;;  %v1609_v34 = vadd.f32 %v1599_v19, %v1580_v16 }
 0x612   :  { %v1631_v30 = vrot.slane %v1623_v63, %v3005_v33  ;;  %v1651_v0 = vrot.slane %v2306_v4, 2  ;;  %v1652_v16 = vrot.slane %v2308_v26, 2 }
 0x613   :  { %2696 = vpow2.f32 %v2309_v15  ;;  %v2310_v20 = vmul.f32 -1.442695, %v1565_v45  ;;  %v1610_v35 = vadd.f32 %v1606_v32, %v1581_v62  ;;  %v2311_v27 = vmul.f32 -1.442695, %v1609_v34 }
 0x614   :  { %v1632_v53 = vcombine.high %v1631_v30, %v1631_v30  ;;  %v1639_v14 = vrot.slane %v1631_v30, %v3005_v33 }
 0x615   :  { %2698 = vpow2.f32 %v2310_v20  ;;  %v2312_v50 = vmul.f32 -1.442695, %v1610_v35 }
 0x616   :  { %2700 = vpow2.f32 %v2311_v27  ;;  %v1646_v19 = vrot.slane %v1632_v53, %v3005_v33 }
 0x617   :  { %2702 = vpow2.f32 %v2312_v50 }
 0x620   :  { %v2697_v3 = vpop.eup %2696 }
 0x621   :  { %v1572_v5 = vadd.f32 1.0, %v2697_v3 }
 0x622   :  { %v2699_v6 = vpop.eup %2698 }
 0x623   :  { %v1573_v7 = vadd.f32 1.0, %v2699_v6  ;;  %2704 = vrcp.f32 %v1572_v5  ;;  %v2701_v9 = vpop.eup %2700 }
 0x624   :  { %v2703_v10 = vpop.eup %2702  ;;  %v1617_v11 = vadd.f32 1.0, %v2701_v9 }
 0x625   :  { %2706 = vrcp.f32 %v1573_v7  ;;  %v1618_v45 = vadd.f32 1.0, %v2703_v10 }
 0x626   :  { %2708 = vrcp.f32 %v1617_v11 }
 0x627   :  { %2710 = vrcp.f32 %v1618_v45 }
 0x630   :  { %v2705_v15 = vpop.eup %2704 }
 0x631   :  { %v1649_v20 = vmul.f32 %v2705_v15, %v1639_v14 }
 0x632   :  { %v2707_v62 = vpop.eup %2706 }
 0x633   :  { %v1650_v32 = vmul.f32 %v2707_v62, %v1646_v19  ;;  %v1655_v34 = vadd.f32 %v1651_v0, %v1649_v20  ;;  %v2709_v35 = vpop.eup %2708 }
 0x634   :  { %v2711_v27 = vpop.eup %2710  ;;  %v1659_v50 = vsub.f32 1.0, %v2709_v35  ;;  %v1663_v6 = vmul.f32 %v2709_v35, %v3380_v17 }
 0x635   :  { %v1656_v51 = vadd.f32 %v1652_v16, %v1650_v32  ;;  %2712 = vtanh.f32 %v1655_v34  ;;  %v1660_v3 = vsub.f32 1.0, %v2711_v27  ;;  %v1664_v63 = vmul.f32 %v2711_v27, %v3382_v18 }
 0x637   :  { %2714 = vtanh.f32 %v1656_v51 }
 0x642   :  { %v2713_v4 = vpop.eup %2712 }
 0x643   :  { %v1661_v5 = vmul.f32 %v2713_v4, %v1659_v50 }
 0x644   :  { %v2715_v26 = vpop.eup %2714 }
 0x645   :  { %v1662_v7 = vmul.f32 %v2715_v26, %v1660_v3  ;;  %v3467_v30 = vadd.f32 %v1663_v6, %v1661_v5 }
 0x647   :  { %v3469_v9 = vadd.f32 %v1664_v63, %v1662_v7  ;;  %v1695_v10 = vpack.c.bf16 %v3467_v30, %v3467_v30 }
 0x649   :  { %v1696_v53 = vpack.c.bf16 %v3469_v9, %v3469_v9  ;;  %v1699_v0 = vunpack.c.l.b16 %v1695_v10 }
 0x64b   :  { %v1700_v11 = vunpack.c.l.b16 %v1696_v53 }
 0x64d   :  { %v1701_v14 = vrot.slane %v1700_v11, 7 }
 0x64f   :  { %v1702_v45 = vsel %vm466_vm1, %v1701_v14, %v1699_v0 }
 0x650   :  { %v1703_v15 = vpack.c.b16 %v1702_v45, %v1702_v45 }
 0x652   :  { %1738 = vmatmul.mubr.bf16.vlgmr.msra.gmra.mxu0 %v1703_v15  ;;  %2537 = vmatmul.mubr.bf16.vlgmr.msra.gmra.mxu1 %v1703_v15 }
 0x653   :  { %1953 = vmatpush1.bf16.msra.mxu0 %v3230_v22  ;;  %2541 = vmatpush3.bf16.msra.mxu1 %v3236_v52 }
 0x654   :  { %1954 = vmatprep.subr.bf16.mxu0 %v3242_v36  ;;  %2542 = vmatprep.subr.bf16.mxu1 %v2781_v1  ;;  %v2313_v36 = vld [vmem:[%s3605_s0 + $0x6] ss:$8 sm:$0x7] }
 0x655   :  { %1984 = vmatprep.mubr.bf16.mxu0 %v2782_v2  ;;  %2556 = vmatprep.mubr.msk.bf16.mxu1 %vm2783_vm0, %v2781_v1  ;;  %v1898_v6 = vrot.slane %v2313_v36, 2 }
 0x657   :  { %1955 = vmatpush1.bf16.msra.mxu0 %v3252_v54  ;;  %2543 = vmatpush3.bf16.msra.mxu1 %v3258_v55 }
 0x658   :  { %1956 = vmatprep.subr.bf16.mxu0 %v3264_v39  ;;  %2544 = vmatprep.subr.bf16.mxu1 %v2781_v1 }
 0x65b   :  { %1957 = vmatpush1.bf16.msra.mxu0 %v3271_v41  ;;  %2545 = vmatpush3.bf16.msra.mxu1 %v3277_v56 }
 0x65c   :  { %1958 = vmatprep.subr.bf16.mxu0 %v3283_v57  ;;  %2546 = vmatprep.subr.bf16.mxu1 %v2781_v1 }
 0x65f   :  { %1959 = vmatpush1.bf16.msra.mxu0 %v3290_v42  ;;  %2547 = vmatpush3.bf16.msra.mxu1 %v3296_v58 }
 0x660   :  { %1960 = vmatprep.subr.bf16.mxu0 %v3302_v59  ;;  %2548 = vmatprep.subr.bf16.mxu1 %v2781_v1 }
 0x663   :  { %1961 = vmatpush1.bf16.msra.mxu0 %v3309_v44  ;;  %2549 = vmatpush3.bf16.msra.mxu1 %v3412_v40 }
 0x664   :  { %1962 = vmatprep.subr.bf16.mxu0 %v3316_v60  ;;  %2550 = vmatprep.subr.bf16.mxu1 %v2781_v1 }
 0x667   :  { %1963 = vmatpush1.bf16.msra.mxu0 %v3323_v48  ;;  %2551 = vmatpush3.bf16.msra.mxu1 %v3421_v43 }
 0x668   :  { %1964 = vmatprep.subr.bf16.mxu0 %v3330_v21  ;;  %2552 = vmatprep.subr.bf16.mxu1 %v2781_v1 }
 0x66b   :  { %1965 = vmatpush1.bf16.msra.mxu0 %v3337_v61  ;;  %2553 = vmatpush3.bf16.msra.mxu1 %v3430_v47 }
 0x66c   :  { %1966 = vmatprep.subr.bf16.mxu0 %v3344_v24  ;;  %2554 = vmatprep.subr.bf16.mxu1 %v2781_v1  ;;  %v2315_v1 = vld [vmem:[%s3605_s0 + $0x1e] ss:$8 sm:$0x7]  ;;  %v1827_v24 = vrot.slane %v2313_v36, 1 }
 0x66d   :  { %v1828_v43 = vrot.slane %v2315_v1, 1  ;;  %v1899_v10 = vrot.slane %v2315_v1, 2 }
 0x66f   :  { %1967 = vmatpush1.bf16.msra.mxu0 %v3351_v46  ;;  %2555 = vmatpush3.bf16.msra.mxu1 %v3439_v49 }
 0x712   :  { %v1739_v2 = vpop.f32.mrf.mxu0  ;;  %v1780_v22 = vpop.f32.mrf.mxu1 }
 0x713   :  { %v1793_v52 = vrot.slane %v1739_v2, %v3005_v33  ;;  %v1870_v35 = vadd.f32 %v3459_v8, %v1780_v22 }
 0x714   :  { %v1741_v54 = vpop.f32.mrf.mxu0  ;;  %v2538_v55 = vpop.f32.mrf.mxu1 }
 0x715   :  { %v1794_v39 = vcombine.high %v1793_v52, %v1793_v52  ;;  %v1801_v41 = vrot.slane %v1793_v52, %v3005_v33  ;;  %v1838_v56 = vrot.slane %v1741_v54, %v3005_v33  ;;  %v1878_v27 = vrot.slane %v1870_v35, %v3005_v33 }
 0x716   :  { %v1743_v57 = vpop.f32.mrf.mxu0  ;;  %v1783_v42 = vpop.f32.mrf.mxu1 }
 0x717   :  { %v1808_v58 = vrot.slane %v1794_v39, %v3005_v33  ;;  %v1811_v59 = vadd.f32 %v2313_v36, %v1801_v41  ;;  %v1839_v44 = vcombine.high %v1838_v56, %v1838_v56  ;;  %v1846_v46 = vrot.slane %v1838_v56, %v3005_v33 }
 0x718   :  { %v1744_v60 = vpop.f32.mrf.mxu0  ;;  %v2539_v48 = vpop.f32.mrf.mxu1  ;;  %v1879_v3 = vcombine.high %v1878_v27, %v1878_v27  ;;  %v1886_v26 = vrot.slane %v1878_v27, %v3005_v33 }
 0x719   :  { %v1812_v21 = vadd.f32 %v2315_v1, %v1808_v58  ;;  %v2316_v61 = vmul.f32 -1.442695, %v1811_v59  ;;  %v1853_v47 = vrot.slane %v1839_v44, %v3005_v33  ;;  %v1856_v49 = vadd.f32 %v1846_v46, %v1827_v24 }
 0x71a   :  { %v1893_v53 = vrot.slane %v1879_v3, %v3005_v33 }
 0x71b   :  { %2716 = vpow2.f32 %v2316_v61  ;;  %v2317_v40 = vmul.f32 -1.442695, %v1812_v21  ;;  %v1857_v16 = vadd.f32 %v1853_v47, %v1828_v43  ;;  %v2318_v19 = vmul.f32 -1.442695, %v1856_v49 }
 0x71c   :  { %v2320_v43 = vld [vmem:[%s3605_s0 + $0x7] ss:$8 sm:$0x7] }
 0x71d   :  { %2718 = vpow2.f32 %v2317_v40  ;;  %v2319_v20 = vmul.f32 -1.442695, %v1857_v16 }
 0x71e   :  { %2720 = vpow2.f32 %v2318_v19 }
 0x71f   :  { %2722 = vpow2.f32 %v2319_v20 }
 0x728   :  { %v2717_v62 = vpop.eup %2716 }
 0x729   :  { %v1819_v32 = vadd.f32 1.0, %v2717_v62  ;;  %v2322_v62 = vld [vmem:[%s3605_s0 + $0x1f] ss:$8 sm:$0x7] }
 0x72a   :  { %v2719_v34 = vpop.eup %2718 }
 0x72b   :  { %v1820_v51 = vadd.f32 1.0, %v2719_v34  ;;  %2724 = vrcp.f32 %v1819_v32  ;;  %v2721_v50 = vpop.eup %2720 }
 0x72c   :  { %v2723_v4 = vpop.eup %2722  ;;  %v1864_v5 = vadd.f32 1.0, %v2721_v50 }
 0x72d   :  { %2726 = vrcp.f32 %v1820_v51  ;;  %v1865_v7 = vadd.f32 1.0, %v2723_v4 }
 0x72e   :  { %2728 = vrcp.f32 %v1864_v5 }
 0x72f   :  { %2730 = vrcp.f32 %v1865_v7 }
 0x738   :  { %v2725_v63 = vpop.eup %2724 }
 0x739   :  { %v1896_v11 = vmul.f32 %v2725_v63, %v1886_v26  ;;  %v2075_v63 = vrot.slane %v2322_v62, 1 }
 0x73a   :  { %v2727_v0 = vpop.eup %2726 }
 0x73b   :  { %v1897_v14 = vmul.f32 %v2727_v0, %v1893_v53  ;;  %v1902_v45 = vadd.f32 %v1898_v6, %v1896_v11  ;;  %v2729_v2 = vpop.eup %2728  ;;  %v2074_v6 = vrot.slane %v2320_v43, 1 }
 0x73c   :  { %v2731_v22 = vpop.eup %2730  ;;  %v1906_v52 = vsub.f32 1.0, %v2729_v2  ;;  %v1910_v39 = vmul.f32 %v2729_v2, %v3467_v30 }
 0x73d   :  { %v1903_v15 = vadd.f32 %v1899_v10, %v1897_v14  ;;  %2732 = vtanh.f32 %v1902_v45  ;;  %v1907_v54 = vsub.f32 1.0, %v2731_v22  ;;  %v1911_v1 = vmul.f32 %v2731_v22, %v3469_v9 }
 0x73f   :  { %2734 = vtanh.f32 %v1903_v15 }
 0x74a   :  { %v2733_v36 = vpop.eup %2732 }
 0x74b   :  { %v1908_v55 = vmul.f32 %v2733_v36, %v1906_v52 }
 0x74c   :  { %v2735_v41 = vpop.eup %2734 }
 0x74d   :  { %v1909_v56 = vmul.f32 %v2735_v41, %v1907_v54  ;;  %v3527_v57 = vadd.f32 %v1910_v39, %v1908_v55 }
 0x74f   :  { %v3529_v42 = vadd.f32 %v1911_v1, %v1909_v56  ;;  %v1942_v58 = vpack.c.bf16 %v3527_v57, %v3527_v57  ;;  %v2145_v56 = vrot.slane %v2320_v43, 2 }
 0x751   :  { %v1943_v59 = vpack.c.bf16 %v3529_v42, %v3529_v42  ;;  %v1946_v60 = vunpack.c.l.b16 %v1942_v58 }
 0x753   :  { %v1947_v44 = vunpack.c.l.b16 %v1943_v59 }
 0x755   :  { %v1948_v48 = vrot.slane %v1947_v44, 7  ;;  %v2146_v44 = vrot.slane %v2322_v62, 2 }
 0x757   :  { %v1949_v21 = vsel %vm466_vm1, %v1948_v48, %v1946_v60 }
 0x758   :  { %v1950_v61 = vpack.c.b16 %v1949_v21, %v1949_v21 }
 0x75a   :  { %1985 = vmatmul.mubr.bf16.vlgmr.msra.gmra.mxu0 %v1950_v61  ;;  %2557 = vmatmul.mubr.bf16.vlgmr.msra.gmra.mxu1 %v1950_v61 }
 0x81a   :  { %v1986_v24 = vpop.f32.mrf.mxu0  ;;  %v2027_v46 = vpop.f32.mrf.mxu1 }
 0x81b   :  { %v2040_v40 = vrot.slane %v1986_v24, %v3005_v33  ;;  %v2117_v52 = vadd.f32 %v3459_v8, %v2027_v46  ;;  %v436_v46 = vsub.s32 0, %v3002_v31 }
 0x81c   :  { %v1988_v47 = vpop.f32.mrf.mxu0  ;;  %v2558_v49 = vpop.f32.mrf.mxu1 }
 0x81d   :  { %v2041_v16 = vcombine.high %v2040_v40, %v2040_v40  ;;  %v2048_v19 = vrot.slane %v2040_v40, %v3005_v33  ;;  %v2085_v20 = vrot.slane %v1988_v47, %v3005_v33  ;;  %v2125_v36 = vrot.slane %v2117_v52, %v3005_v33 }
 0x81e   :  { %v1990_v32 = vpop.f32.mrf.mxu0  ;;  %v2030_v34 = vpop.f32.mrf.mxu1  ;;  %v437_v40 = vrot.slane %v3032_v25, %v436_v46  ;;  %v685_v47 = vrot.slane %v3094_v23, %v436_v46  ;;  %v689_v49 = vrot.slane %v3096_v29, %v436_v46  ;;  %v936_v23 = vrot.slane %v3158_v38, %v436_v46 }
 0x81f   :  { %v2055_v51 = vrot.slane %v2041_v16, %v3005_v33  ;;  %v2058_v35 = vadd.f32 %v2320_v43, %v2048_v19  ;;  %v2086_v27 = vcombine.high %v2085_v20, %v2085_v20  ;;  %v2093_v26 = vrot.slane %v2085_v20, %v3005_v33 }
 0x820   :  { %v1991_v50 = vpop.f32.mrf.mxu0  ;;  %v2559_v4 = vpop.f32.mrf.mxu1  ;;  %v2126_v39 = vcombine.high %v2125_v36, %v2125_v36  ;;  %v2133_v1 = vrot.slane %v2125_v36, %v3005_v33  ;;  %v441_v43 = vrot.slane %v3034_v28, %v436_v46  ;;  %v932_v16 = vrot.slane %v3156_v37, %v436_v46 }
 0x821   :  { %v2059_v3 = vadd.f32 %v2322_v62, %v2055_v51  ;;  %v2323_v5 = vmul.f32 -1.442695, %v2058_v35  ;;  %v2100_v10 = vrot.slane %v2086_v27, %v3005_v33  ;;  %v2103_v53 = vadd.f32 %v2093_v26, %v2074_v6 }
 0x822   :  { %v2140_v60 = vrot.slane %v2126_v39, %v3005_v33  ;;  %v1179_v20 = vrot.slane %v3218_v12, %v436_v46  ;;  %v444_v62 = vsel %vm431_vm2, %v437_v40, 0.0  ;;  %v445_v32 = vsel %vm431_vm2, %v441_v43, 0.0 }
 0x823   :  { %2736 = vpow2.f32 %v2323_v5  ;;  %v2324_v7 = vmul.f32 -1.442695, %v2059_v3  ;;  %v2104_v11 = vadd.f32 %v2100_v10, %v2075_v63  ;;  %v2325_v0 = vmul.f32 -1.442695, %v2103_v53 }
 0x824   :  { %v692_v34 = vsel %vm679_vm3, %v685_v47, %v444_v62  ;;  %v693_v28 = vsel %vm679_vm3, %v689_v49, %v445_v32  ;;  %v1183_v37 = vrot.slane %v3220_v13, %v436_v46  ;;  %v1426_v12 = vrot.slane %v3380_v17, %v436_v46 }
 0x825   :  { %2738 = vpow2.f32 %v2324_v7  ;;  %v2326_v14 = vmul.f32 -1.442695, %v2104_v11  ;;  %v939_v51 = vsel %vm926_vm4, %v932_v16, %v692_v34  ;;  %v1673_v50 = vrot.slane %v3467_v30, %v436_v46 }
 0x826   :  { %2740 = vpow2.f32 %v2325_v0  ;;  %v1186_v27 = vsel %vm1173_vm5, %v1179_v20, %v939_v51  ;;  %v1430_v6 = vrot.slane %v3382_v18, %v436_v46  ;;  %v1677_v13 = vrot.slane %v3469_v9, %v436_v46 }
 0x827   :  { %2742 = vpow2.f32 %v2326_v14  ;;  %v1920_v26 = vrot.slane %v3527_v57, %v436_v46  ;;  %v940_v30 = vsel %vm926_vm4, %v936_v23, %v693_v28  ;;  %v1433_v10 = vsel %vm1420_vm6, %v1426_v12, %v1186_v27 }
 0x828   :  { %v1924_v18 = vrot.slane %v3529_v42, %v436_v46  ;;  %v1187_v9 = vsel %vm1173_vm5, %v1183_v37, %v940_v30 }
 0x829   :  { %v1434_v0 = vsel %vm1420_vm6, %v1430_v6, %v1187_v9 }
 0x830   :  { %v2737_v45 = vpop.eup %2736 }
 0x831   :  { %v2066_v15 = vadd.f32 1.0, %v2737_v45  ;;  %v1681_v45 = vsel %vm1667_vm7, %v1677_v13, %v1434_v0 }
 0x832   :  { %v2739_v2 = vpop.eup %2738 }
 0x833   :  { %v2067_v22 = vadd.f32 1.0, %v2739_v2  ;;  %2744 = vrcp.f32 %v2066_v15  ;;  %v2741_v54 = vpop.eup %2740 }
 0x834   :  { %v2743_v55 = vpop.eup %2742  ;;  %v2111_v41 = vadd.f32 1.0, %v2741_v54 }
 0x835   :  { %2746 = vrcp.f32 %v2067_v22  ;;  %v2112_v58 = vadd.f32 1.0, %v2743_v55  ;;  %v1928_v22 = vsel %vm1914_vm8, %v1924_v18, %v1681_v45 }
 0x836   :  { %2748 = vrcp.f32 %v2111_v41 }
 0x837   :  { %2750 = vrcp.f32 %v2112_v58 }
 0x840   :  { %v2745_v59 = vpop.eup %2744 }
 0x841   :  { %v2143_v48 = vmul.f32 %v2745_v59, %v2133_v1 }
 0x842   :  { %v2747_v21 = vpop.eup %2746 }
 0x843   :  { %v2144_v61 = vmul.f32 %v2747_v21, %v2140_v60  ;;  %v2149_v24 = vadd.f32 %v2145_v56, %v2143_v48  ;;  %v2749_v19 = vpop.eup %2748 }
 0x844   :  { %v2751_v25 = vpop.eup %2750  ;;  %v2153_v29 = vsub.f32 1.0, %v2749_v19  ;;  %v2157_v38 = vmul.f32 %v2749_v19, %v3527_v57  ;;  %v1680_v57 = vsel %vm1667_vm7, %v1673_v50, %v1433_v10 }
 0x845   :  { %v2150_v8 = vadd.f32 %v2146_v44, %v2144_v61  ;;  %2752 = vtanh.f32 %v2149_v24  ;;  %v2154_v4 = vsub.f32 1.0, %v2751_v25  ;;  %v2158_v17 = vmul.f32 %v2751_v25, %v3529_v42 }
 0x846   :  { %v1927_v14 = vsel %vm1914_vm8, %v1920_v26, %v1680_v57 }
 0x847   :  { %2754 = vtanh.f32 %v2150_v8 }
 0x852   :  { %v2753_v35 = vpop.eup %2752 }
 0x853   :  { %v2155_v3 = vmul.f32 %v2753_v35, %v2153_v29 }
 0x854   :  { %v2755_v5 = vpop.eup %2754 }
 0x855   :  { %v2156_v7 = vmul.f32 %v2755_v5, %v2154_v4  ;;  %v2159_v63 = vadd.f32 %v2157_v38, %v2155_v3 }
 0x857   :  { %v2160_v53 = vadd.f32 %v2158_v17, %v2156_v7  ;;  %v2167_v11 = vrot.slane %v2159_v63, %v436_v46 }
 0x859   :  { %v2171_v42 = vrot.slane %v2160_v53, %v436_v46  ;;  %v2174_v15 = vsel %vm2161_vm9, %v2167_v11, %v1927_v14  ;;  %v2178_v2 = vcombine.low %v2159_v63, %v2160_v53 }
 0x85a   :  { %2176 = vst [vmem:[%s3607_s3] sm:$0xff] %v2174_v15 }
 0x85b   :  { %v2175_v52 = vsel %vm2161_vm9, %v2171_v42, %v1928_v22  ;;  %v2185_v36 = vrot.slane %v2178_v2, %v3005_v33 }
 0x85c   :  { %2177 = vst [vmem:[%s3607_s3 + $0x8] sm:$0xff] %v2175_v52 }
 0x85d   :  { %2327 = vst.sshfl [vmem:[#allocation2] sm:$0x5 pattern:$0x73625140] %v2185_v36 }

</bundles_post_ra>
